<compile_context>
chip_gen: v6e
topology: v6e:2x2x1
jax: 0.10.0
libtpu: 0.0.40
codegen_flags: <defaults>
</compile_context>

<pallas_src>
import functools

import jax
import jax.numpy as jnp
from jax import lax
from jax.experimental import pallas as pl
from jax.experimental.pallas import tpu as pltpu


def _ceil8(x):
    return -(-x // 8) * 8


@functools.lru_cache(maxsize=1)
def _vmem_limit():
    """Generation-aware VMEM limit: 3/4 of physical capacity."""
    try:
        cap = pltpu.get_tpu_info().vmem_capacity_bytes
        return int(cap * 3 // 4)          # ~96 MiB on v5e/v6e, ~48 MiB on v7x
    except Exception:                     # pragma: no cover - conservative fallback
        return 48 * 1024 * 1024


# --------------------------- fused forward kernel ---------------------------
def _net2a_kernel(nfeat_ref, eagg_ref, adj_ref, deg_ref, w_ref, v_ref,
                  wr_ref, br_ref, out_ref, *, hf, nfp, efp, act):
    f32 = jnp.float32
    adj = adj_ref[...].astype(f32)        # bf16 -> f32 once (exact: small ints)
    deg = deg_ref[...]
    # Zero in-degree -> mean contribution 0 (DGL semantics).  The approx
    # reciprocal of 0 is discarded by the select; it never propagates.
    inv_deg = jnp.where(deg > 0.0, pl.reciprocal(deg, approx=True), 0.0)
    # Edge-softmax mask bias, computed ONCE for all 4 GATConvs.
    mask_bias = jnp.where(adj > 0.0, 0.0, -1e30)

    # static row offsets inside the packed weight slab
    o_nw = 0                      # nfeat_lin weight        (nfp rows)
    o_ew = o_nw + nfp             # efeat_lin weight        (efp rows)
    o_g = o_ew + efp              # gat1/2/3 fc weights     (3*hf rows)
    o_w1 = o_g + 3 * hf           # edge_lin1 weight        (3*hf rows)
    o_w2 = o_w1 + 3 * hf          # edge_lin2 weight        (hf rows)
    o_we = o_w2 + hf              # gat_e fc weight         (2*hf rows)

    def W(off, rows=None):
        rows = hf if rows is None else rows
        return w_ref[off:off + rows, :]

    def V(row):                   # one (1, hf) bias / attention vector
        return v_ref[row:row + 1, :]

    # ---- input linear for node features (nn.Linear: y = x @ W^T + b) ----
    h0 = jnp.dot(nfeat_ref[...], W(o_nw, nfp), preferred_element_type=f32) + V(0)

    # ---- copy_e sum reducer folded through efeat_lin:
    #      e_sum[v] = (sum_{e->v} efeat[e]) @ Ew^T + deg[v] * eb
    e_sum = jnp.dot(eagg_ref[...], W(o_ew, efp), preferred_element_type=f32) + deg * V(1)

    # ---- DGL GATConv core (1 head, leaky_relu(0.2), edge softmax, + bias) ----
    def gat_core(feat, al, ar, b):
        # er[v] = <feat[v], attn_r>  -> (N, 1)   (VPU reduce)
        er = jnp.sum(feat * ar, axis=-1, keepdims=True)
        # el[u] = <feat[u], attn_l>  as a (1, N) row via a tiny matvec
        el = lax.dot_general(al, feat, (((1,), (1,)), ((), ())),
                             preferred_element_type=f32)              # (1, N)
        s = er + el                                                   # s[v,u] = el[u] + er[v]
        s = jnp.where(s > 0.0, s, 0.2 * s) + mask_bias                # leaky_relu + mask
        m = jnp.max(s, axis=-1, keepdims=True)
        p = jnp.exp(s - m) * adj                                      # edge-softmax numerator
        denom = jnp.sum(p, axis=-1, keepdims=True)
        alpha = p * jnp.where(denom > 0.0,
                              pl.reciprocal(denom, approx=True), 0.0)
        return jnp.dot(alpha, feat, preferred_element_type=f32) + b

    # ---- three node GATConvs; F.relu applied to each GAT input ----
    h = h0
    gat_outs = []
    for i in range(3):
        feat = jnp.dot(jnp.maximum(h, 0.0), W(o_g + i * hf),
                       preferred_element_type=f32)
        h = gat_core(feat, V(2 + i), V(5 + i), V(8 + i))
        gat_outs.append(h)
    h1, h2, h3 = gat_outs

    # ---- update_all: copy_u with sum (mean derived via inv_deg below) ----
    v_sum = jnp.dot(adj, h0, preferred_element_type=f32)              # (N, H)

    # ---- shared 2-layer edge MLP; first layer evaluated once for both
    # branches using  [v_mean|e_mean|h0] @ W1^T = inv_deg*([v_sum|e_sum]@W1ab^T)
    #                                             + h0 @ W1c^T + b1
    q = (jnp.dot(v_sum, W(o_w1), preferred_element_type=f32)
         + jnp.dot(e_sum, W(o_w1 + hf), preferred_element_type=f32))
    r = jnp.dot(h0, W(o_w1 + 2 * hf), preferred_element_type=f32) + V(11)
    w2 = W(o_w2)
    b2 = V(12)
    hn_e_mean = jnp.dot(inv_deg * q + r, w2, preferred_element_type=f32) + b2
    hn_e_sum = jnp.dot(q + r, w2, preferred_element_type=f32) + b2

    # ---- edge-derived GATConv on relu(concat(hn_e_mean, hn_e_sum)) ----
    # split-weight form: relu(cat) @ We^T = relu(mean)@We_a + relu(sum)@We_b
    feat_e = (jnp.dot(jnp.maximum(hn_e_mean, 0.0), W(o_we),
                      preferred_element_type=f32)
              + jnp.dot(jnp.maximum(hn_e_sum, 0.0), W(o_we + hf),
                        preferred_element_type=f32))
    he1 = gat_core(feat_e, V(13), V(14), V(15))

    # ---- readout on concat of six (N, H) blocks (split-weight form) ----
    y = br_ref[...]
    for i, blk in enumerate((h1, h2, h3, hn_e_mean, hn_e_sum, he1)):
        y = y + jnp.dot(blk, wr_ref[i * hf:(i + 1) * hf, :],
                        preferred_element_type=f32)
    if act == "sigmoid":
        y = jax.nn.sigmoid(y)
    else:
        y = jnp.tanh(y)
    out_ref[...] = y


# ------------------------------ parameters ----------------------------------
def init_params(key, nfeats, efeats, h, n_target):
    """PyTorch-layout parameters (nn.Linear: w (out,in), b (out,))."""
    keys = jax.random.split(key, 9)

    def lin(k, out_f, in_f):
        kw, kb = jax.random.split(k)
        return (jax.random.normal(kw, (out_f, in_f), jnp.float32) * 0.1,
                jax.random.normal(kb, (out_f,), jnp.float32) * 0.1)

    def gat(k, out_f, in_f):
        k1, k2, k3, k4 = jax.random.split(k, 4)
        return dict(
            w=jax.random.normal(k1, (out_f, in_f), jnp.float32) * 0.1,
            al=jax.random.normal(k2, (out_f,), jnp.float32) * 0.1,
            ar=jax.random.normal(k3, (out_f,), jnp.float32) * 0.1,
            b=jax.random.normal(k4, (out_f,), jnp.float32) * 0.1,
        )

    return {
        "nfeat_lin": lin(keys[0], h, nfeats),
        "efeat_lin": lin(keys[1], h, efeats),
        "gat1": gat(keys[2], h, h),
        "gat2": gat(keys[3], h, h),
        "gat3": gat(keys[4], h, h),
        "edge_lin1": lin(keys[5], h, 3 * h),
        "edge_lin2": lin(keys[6], h, h),
        "gat_e": gat(keys[7], h, 2 * h),
        "readout": lin(keys[8], n_target, 6 * h),
    }


def prepare_params(p):
    """One-time layout prep: transpose weights, pad input dims to multiples
    of 8, and pack everything into a single weight slab + a single
    bias/attention-vector slab (+ readout weight/bias)."""
    f32 = jnp.float32

    def lin(wb):
        w, b = wb
        return w.T.astype(f32), b.reshape(1, -1).astype(f32)

    nw, nb = lin(p["nfeat_lin"])                      # (nfeats, H), (1, H)
    ew, eb = lin(p["efeat_lin"])                      # (efeats, H), (1, H)
    h = nw.shape[1]
    assert h % 8 == 0, "hidden size must be a multiple of 8"
    nfp, efp = _ceil8(nw.shape[0]), _ceil8(ew.shape[0])
    nw = jnp.pad(nw, ((0, nfp - nw.shape[0]), (0, 0)))
    ew = jnp.pad(ew, ((0, efp - ew.shape[0]), (0, 0)))

    gats = (p["gat1"], p["gat2"], p["gat3"])
    gw = [g["w"].T.astype(f32) for g in gats]         # (H, H) each
    w1, b1 = lin(p["edge_lin1"])                      # (3H, H)
    w2, b2 = lin(p["edge_lin2"])                      # (H, H)
    ge = p["gat_e"]
    we = ge["w"].T.astype(f32)                        # (2H, H)
    wr, br = lin(p["readout"])                        # (6H, n_target), (1, n_target)

    # one stacked weight slab: rows = nfp + efp + 3H + 3H + H + 2H
    wslab = jnp.concatenate([nw, ew] + gw + [w1, w2, we], axis=0)

    # one (16, H) slab for every bias / attention vector
    vec = lambda a: a.reshape(1, -1).astype(f32)
    vslab = jnp.concatenate(
        [nb, eb]
        + [vec(g["al"]) for g in gats]
        + [vec(g["ar"]) for g in gats]
        + [vec(g["b"]) for g in gats]
        + [b1, b2, vec(ge["al"]), vec(ge["ar"]), vec(ge["b"])],
        axis=0)

    return dict(wslab=wslab, vslab=vslab, wr=wr, br=br)


def prepare_graph(src, dst, n_nodes):
    """One-time dense graph structure (hoisted out of the forward pass)."""
    src = jnp.asarray(src, jnp.int32)
    dst = jnp.asarray(dst, jnp.int32)
    adj = jnp.zeros((n_nodes, n_nodes), jnp.float32).at[dst, src].add(1.0)
    deg = jnp.sum(adj, axis=1, keepdims=True)               # in-degree
    # bf16 represents integer multiplicities exactly only below 256
    assert float(jnp.max(adj)) < 256.0, "edge multiplicity too large for bf16 adj"
    return dict(adj=adj.astype(jnp.bfloat16), deg=deg.astype(jnp.float32), dst=dst)


# ------------------------------ Net2a forward -------------------------------
@functools.partial(jax.jit, static_argnames=("activation",))
def net2a_forward(prep, graph, nfeat, efeat, activation="sig"):
    if activation == "sig":
        act = "sigmoid"
    elif activation == "tanh":
        act = "tanh"
    else:
        raise ValueError(f"Undefined activation {activation}")

    adj, deg, dst = graph["adj"], graph["deg"], graph["dst"]
    n = adj.shape[0]
    hf = prep["vslab"].shape[1]
    n_target = prep["br"].shape[1]

    nfp = _ceil8(nfeat.shape[1])
    efp = _ceil8(efeat.shape[1])
    nfeat_p = jnp.pad(nfeat.astype(jnp.float32),
                      ((0, 0), (0, nfp - nfeat.shape[1])))
    # cheap per-destination segment-sum of raw edge features (replaces the
    # (N,E) incidence matmul inside the kernel)
    e_agg = jnp.zeros((n, efeat.shape[1]), jnp.float32).at[dst].add(
        efeat.astype(jnp.float32))
    e_agg_p = jnp.pad(e_agg, ((0, 0), (0, efp - efeat.shape[1])))

    kernel = functools.partial(_net2a_kernel, hf=hf, nfp=nfp, efp=efp, act=act)
    vmem_spec = pl.BlockSpec(memory_space=pltpu.MemorySpace.VMEM)
    return pl.pallas_call(
        kernel,
        out_shape=jax.ShapeDtypeStruct((n, n_target), jnp.float32),
        in_specs=[vmem_spec] * 8,
        out_specs=vmem_spec,
        compiler_params=pltpu.CompilerParams(vmem_limit_bytes=_vmem_limit()),
    )(nfeat_p, e_agg_p, adj, deg,
      prep["wslab"], prep["vslab"], prep["wr"], prep["br"])


if __name__ == "__main__":
    N, E = 8, 16
    NFEATS, EFEATS, H, N_TARGET = 16, 8, 32, 4

    key = jax.random.PRNGKey(0)
    k1, k2, k3 = jax.random.split(key, 3)

    # bidirectional ring graph: 16 directed edges, every node has in-degree 2
    idx = jnp.arange(N, dtype=jnp.int32)
    src = jnp.concatenate([idx, (idx + 1) % N])
    dst = jnp.concatenate([(idx + 1) % N, idx])

    nfeat = jax.random.normal(k1, (N, NFEATS), jnp.float32)   # g.ndata['hv']
    efeat = jax.random.normal(k2, (E, EFEATS), jnp.float32)   # g.edata['he']

    params = prepare_params(init_params(k3, NFEATS, EFEATS, H, N_TARGET))
    graph = prepare_graph(src, dst, N)

    out = net2a_forward(params, graph, nfeat, efeat, activation="sig")
    out = jax.block_until_ready(out)

    assert out.shape == (N, N_TARGET)
    assert bool(jnp.all(jnp.isfinite(out)))
    assert bool(jnp.all((out >= 0.0) & (out <= 1.0)))   # sigmoid range
    print("KERNEL_OK")
</pallas_src>

<mosaic_0001>
module attributes {stable_mosaic.version = 11 : i64} {
  func.func @_net2a_kernel(%arg0: memref<8x16xf32, #tpu.memory_space<vmem>>, %arg1: memref<8x8xf32, #tpu.memory_space<vmem>>, %arg2: memref<8x8xbf16, #tpu.memory_space<vmem>>, %arg3: memref<8x1xf32, #tpu.memory_space<vmem>>, %arg4: memref<312x32xf32, #tpu.memory_space<vmem>>, %arg5: memref<16x32xf32, #tpu.memory_space<vmem>>, %arg6: memref<192x4xf32, #tpu.memory_space<vmem>>, %arg7: memref<1x4xf32, #tpu.memory_space<vmem>>, %arg8: memref<8x4xf32, #tpu.memory_space<vmem>>) attributes {dimension_semantics = [], scalar_prefetch = 0 : i64, scratch_operands = 0 : i64, tpu.core_type = #tpu.core_type<tc>} {
    %c0 = arith.constant 0 : index
    %c0_0 = arith.constant 0 : index
    %0 = vector.load %arg2[%c0, %c0_0] : memref<8x8xbf16, #tpu.memory_space<vmem>>, vector<8x8xbf16>
    %1 = arith.extf %0 : vector<8x8xbf16> to vector<8x8xf32>
    %c0_1 = arith.constant 0 : index
    %c0_2 = arith.constant 0 : index
    %2 = vector.load %arg3[%c0_1, %c0_2] : memref<8x1xf32, #tpu.memory_space<vmem>>, vector<8x1xf32>
    %cst = arith.constant 0.000000e+00 : f32
    %3 = vector.broadcast %cst : f32 to vector<8x1xf32>
    %4 = arith.cmpf ogt, %2, %3 : vector<8x1xf32>
    %5 = tpu.reciprocal %2 {approx = true} : vector<8x1xf32> -> vector<8x1xf32>
    %cst_3 = arith.constant 0.000000e+00 : f32
    %6 = vector.broadcast %cst_3 : f32 to vector<8x1xf32>
    %7 = arith.select %4, %5, %6 : vector<8x1xi1>, vector<8x1xf32>
    %cst_4 = arith.constant 0.000000e+00 : f32
    %8 = vector.broadcast %cst_4 : f32 to vector<8x8xf32>
    %9 = arith.cmpf ogt, %1, %8 : vector<8x8xf32>
    %cst_5 = arith.constant 0.000000e+00 : f32
    %cst_6 = arith.constant -1.000000e+30 : f32
    %10 = vector.broadcast %cst_5 : f32 to vector<8x8xf32>
    %11 = vector.broadcast %cst_6 : f32 to vector<8x8xf32>
    %12 = arith.select %9, %10, %11 : vector<8x8xi1>, vector<8x8xf32>
    %c0_7 = arith.constant 0 : index
    %c0_8 = arith.constant 0 : index
    %13 = vector.load %arg0[%c0_7, %c0_8] : memref<8x16xf32, #tpu.memory_space<vmem>>, vector<8x16xf32>
    %c0_9 = arith.constant 0 : index
    %c0_10 = arith.constant 0 : index
    %14 = vector.load %arg4[%c0_9, %c0_10] : memref<312x32xf32, #tpu.memory_space<vmem>>, vector<16x32xf32>
    %cst_11 = arith.constant dense<0.000000e+00> : vector<8x32xf32>
    %15 = tpu.matmul %13, %14, %cst_11 {dimension_numbers = #tpu.dot_dimension_numbers<[1], [0], [0], [1], [0, 0, 1, 1], [], []>} : vector<8x16xf32>, vector<16x32xf32>, vector<8x32xf32> -> vector<8x32xf32>
    %c0_12 = arith.constant 0 : index
    %c0_13 = arith.constant 0 : index
    %16 = vector.load %arg5[%c0_12, %c0_13] : memref<16x32xf32, #tpu.memory_space<vmem>>, vector<1x32xf32>
    %17 = vector.broadcast %16 : vector<1x32xf32> to vector<8x32xf32>
    %18 = arith.addf %15, %17 : vector<8x32xf32>
    %c0_14 = arith.constant 0 : index
    %c0_15 = arith.constant 0 : index
    %19 = vector.load %arg1[%c0_14, %c0_15] : memref<8x8xf32, #tpu.memory_space<vmem>>, vector<8x8xf32>
    %c16 = arith.constant 16 : index
    %c0_16 = arith.constant 0 : index
    %20 = vector.load %arg4[%c16, %c0_16] : memref<312x32xf32, #tpu.memory_space<vmem>>, vector<8x32xf32>
    %cst_17 = arith.constant dense<0.000000e+00> : vector<8x32xf32>
    %21 = tpu.matmul %19, %20, %cst_17 {dimension_numbers = #tpu.dot_dimension_numbers<[1], [0], [0], [1], [0, 0, 1, 1], [], []>} : vector<8x8xf32>, vector<8x32xf32>, vector<8x32xf32> -> vector<8x32xf32>
    %c1 = arith.constant 1 : index
    %c0_18 = arith.constant 0 : index
    %22 = vector.load %arg5[%c1, %c0_18] : memref<16x32xf32, #tpu.memory_space<vmem>>, vector<1x32xf32>
    %23 = vector.broadcast %2 : vector<8x1xf32> to vector<8x32xf32>
    %24 = vector.broadcast %22 : vector<1x32xf32> to vector<8x32xf32>
    %25 = arith.mulf %23, %24 : vector<8x32xf32>
    %26 = arith.addf %21, %25 : vector<8x32xf32>
    %cst_19 = arith.constant 0.000000e+00 : f32
    %27 = vector.broadcast %cst_19 : f32 to vector<8x32xf32>
    %28 = arith.maximumf %18, %27 : vector<8x32xf32>
    %c24 = arith.constant 24 : index
    %c0_20 = arith.constant 0 : index
    %29 = vector.load %arg4[%c24, %c0_20] : memref<312x32xf32, #tpu.memory_space<vmem>>, vector<32x32xf32>
    %cst_21 = arith.constant dense<0.000000e+00> : vector<8x32xf32>
    %30 = tpu.matmul %28, %29, %cst_21 {dimension_numbers = #tpu.dot_dimension_numbers<[1], [0], [0], [1], [0, 0, 1, 1], [], []>} : vector<8x32xf32>, vector<32x32xf32>, vector<8x32xf32> -> vector<8x32xf32>
    %c2 = arith.constant 2 : index
    %c0_22 = arith.constant 0 : index
    %31 = vector.load %arg5[%c2, %c0_22] : memref<16x32xf32, #tpu.memory_space<vmem>>, vector<1x32xf32>
    %c5 = arith.constant 5 : index
    %c0_23 = arith.constant 0 : index
    %32 = vector.load %arg5[%c5, %c0_23] : memref<16x32xf32, #tpu.memory_space<vmem>>, vector<1x32xf32>
    %c8 = arith.constant 8 : index
    %c0_24 = arith.constant 0 : index
    %33 = vector.load %arg5[%c8, %c0_24] : memref<16x32xf32, #tpu.memory_space<vmem>>, vector<1x32xf32>
    %34 = vector.broadcast %32 : vector<1x32xf32> to vector<8x32xf32>
    %35 = arith.mulf %30, %34 : vector<8x32xf32>
    %cst_25 = arith.constant dense<0.000000e+00> : vector<8xf32>
    %36 = vector.multi_reduction <add>, %35, %cst_25 [1] : vector<8x32xf32> to vector<8xf32>
    %37 = vector.shape_cast %36 : vector<8xf32> to vector<8x1xf32>
    %cst_26 = arith.constant dense<0.000000e+00> : vector<1x8xf32>
    %38 = tpu.matmul %31, %30, %cst_26 {dimension_numbers = #tpu.dot_dimension_numbers<[1], [1], [0], [0], [0, 0, 1, 0], [], []>} : vector<1x32xf32>, vector<8x32xf32>, vector<1x8xf32> -> vector<1x8xf32>
    %39 = vector.broadcast %37 : vector<8x1xf32> to vector<8x8xf32>
    %40 = vector.broadcast %38 : vector<1x8xf32> to vector<8x8xf32>
    %41 = arith.addf %39, %40 : vector<8x8xf32>
    %cst_27 = arith.constant 0.000000e+00 : f32
    %42 = vector.broadcast %cst_27 : f32 to vector<8x8xf32>
    %43 = arith.cmpf ogt, %41, %42 : vector<8x8xf32>
    %cst_28 = arith.constant 2.000000e-01 : f32
    %44 = vector.broadcast %cst_28 : f32 to vector<8x8xf32>
    %45 = arith.mulf %44, %41 : vector<8x8xf32>
    %46 = arith.select %43, %41, %45 : vector<8x8xi1>, vector<8x8xf32>
    %47 = arith.addf %46, %12 : vector<8x8xf32>
    %cst_29 = arith.constant dense<0xFF800000> : vector<8xf32>
    %48 = vector.multi_reduction <maximumf>, %47, %cst_29 [1] : vector<8x8xf32> to vector<8xf32>
    %49 = vector.shape_cast %48 : vector<8xf32> to vector<8x1xf32>
    %50 = vector.broadcast %49 : vector<8x1xf32> to vector<8x8xf32>
    %51 = arith.subf %47, %50 : vector<8x8xf32>
    %52 = math.exp %51 : vector<8x8xf32>
    %53 = arith.mulf %52, %1 : vector<8x8xf32>
    %cst_30 = arith.constant dense<0.000000e+00> : vector<8xf32>
    %54 = vector.multi_reduction <add>, %53, %cst_30 [1] : vector<8x8xf32> to vector<8xf32>
    %55 = vector.shape_cast %54 : vector<8xf32> to vector<8x1xf32>
    %cst_31 = arith.constant 0.000000e+00 : f32
    %56 = vector.broadcast %cst_31 : f32 to vector<8x1xf32>
    %57 = arith.cmpf ogt, %55, %56 : vector<8x1xf32>
    %58 = tpu.reciprocal %55 {approx = true} : vector<8x1xf32> -> vector<8x1xf32>
    %cst_32 = arith.constant 0.000000e+00 : f32
    %59 = vector.broadcast %cst_32 : f32 to vector<8x1xf32>
    %60 = arith.select %57, %58, %59 : vector<8x1xi1>, vector<8x1xf32>
    %61 = vector.broadcast %60 : vector<8x1xf32> to vector<8x8xf32>
    %62 = arith.mulf %53, %61 : vector<8x8xf32>
    %cst_33 = arith.constant dense<0.000000e+00> : vector<8x32xf32>
    %63 = tpu.matmul %62, %30, %cst_33 {dimension_numbers = #tpu.dot_dimension_numbers<[1], [0], [0], [1], [0, 0, 1, 1], [], []>} : vector<8x8xf32>, vector<8x32xf32>, vector<8x32xf32> -> vector<8x32xf32>
    %64 = vector.broadcast %33 : vector<1x32xf32> to vector<8x32xf32>
    %65 = arith.addf %63, %64 : vector<8x32xf32>
    %cst_34 = arith.constant 0.000000e+00 : f32
    %66 = vector.broadcast %cst_34 : f32 to vector<8x32xf32>
    %67 = arith.maximumf %65, %66 : vector<8x32xf32>
    %c56 = arith.constant 56 : index
    %c0_35 = arith.constant 0 : index
    %68 = vector.load %arg4[%c56, %c0_35] : memref<312x32xf32, #tpu.memory_space<vmem>>, vector<32x32xf32>
    %cst_36 = arith.constant dense<0.000000e+00> : vector<8x32xf32>
    %69 = tpu.matmul %67, %68, %cst_36 {dimension_numbers = #tpu.dot_dimension_numbers<[1], [0], [0], [1], [0, 0, 1, 1], [], []>} : vector<8x32xf32>, vector<32x32xf32>, vector<8x32xf32> -> vector<8x32xf32>
    %c3 = arith.constant 3 : index
    %c0_37 = arith.constant 0 : index
    %70 = vector.load %arg5[%c3, %c0_37] : memref<16x32xf32, #tpu.memory_space<vmem>>, vector<1x32xf32>
    %c6 = arith.constant 6 : index
    %c0_38 = arith.constant 0 : index
    %71 = vector.load %arg5[%c6, %c0_38] : memref<16x32xf32, #tpu.memory_space<vmem>>, vector<1x32xf32>
    %c9 = arith.constant 9 : index
    %c0_39 = arith.constant 0 : index
    %72 = vector.load %arg5[%c9, %c0_39] : memref<16x32xf32, #tpu.memory_space<vmem>>, vector<1x32xf32>
    %73 = vector.broadcast %71 : vector<1x32xf32> to vector<8x32xf32>
    %74 = arith.mulf %69, %73 : vector<8x32xf32>
    %cst_40 = arith.constant dense<0.000000e+00> : vector<8xf32>
    %75 = vector.multi_reduction <add>, %74, %cst_40 [1] : vector<8x32xf32> to vector<8xf32>
    %76 = vector.shape_cast %75 : vector<8xf32> to vector<8x1xf32>
    %cst_41 = arith.constant dense<0.000000e+00> : vector<1x8xf32>
    %77 = tpu.matmul %70, %69, %cst_41 {dimension_numbers = #tpu.dot_dimension_numbers<[1], [1], [0], [0], [0, 0, 1, 0], [], []>} : vector<1x32xf32>, vector<8x32xf32>, vector<1x8xf32> -> vector<1x8xf32>
    %78 = vector.broadcast %76 : vector<8x1xf32> to vector<8x8xf32>
    %79 = vector.broadcast %77 : vector<1x8xf32> to vector<8x8xf32>
    %80 = arith.addf %78, %79 : vector<8x8xf32>
    %cst_42 = arith.constant 0.000000e+00 : f32
    %81 = vector.broadcast %cst_42 : f32 to vector<8x8xf32>
    %82 = arith.cmpf ogt, %80, %81 : vector<8x8xf32>
    %cst_43 = arith.constant 2.000000e-01 : f32
    %83 = vector.broadcast %cst_43 : f32 to vector<8x8xf32>
    %84 = arith.mulf %83, %80 : vector<8x8xf32>
    %85 = arith.select %82, %80, %84 : vector<8x8xi1>, vector<8x8xf32>
    %86 = arith.addf %85, %12 : vector<8x8xf32>
    %cst_44 = arith.constant dense<0xFF800000> : vector<8xf32>
    %87 = vector.multi_reduction <maximumf>, %86, %cst_44 [1] : vector<8x8xf32> to vector<8xf32>
    %88 = vector.shape_cast %87 : vector<8xf32> to vector<8x1xf32>
    %89 = vector.broadcast %88 : vector<8x1xf32> to vector<8x8xf32>
    %90 = arith.subf %86, %89 : vector<8x8xf32>
    %91 = math.exp %90 : vector<8x8xf32>
    %92 = arith.mulf %91, %1 : vector<8x8xf32>
    %cst_45 = arith.constant dense<0.000000e+00> : vector<8xf32>
    %93 = vector.multi_reduction <add>, %92, %cst_45 [1] : vector<8x8xf32> to vector<8xf32>
    %94 = vector.shape_cast %93 : vector<8xf32> to vector<8x1xf32>
    %cst_46 = arith.constant 0.000000e+00 : f32
    %95 = vector.broadcast %cst_46 : f32 to vector<8x1xf32>
    %96 = arith.cmpf ogt, %94, %95 : vector<8x1xf32>
    %97 = tpu.reciprocal %94 {approx = true} : vector<8x1xf32> -> vector<8x1xf32>
    %cst_47 = arith.constant 0.000000e+00 : f32
    %98 = vector.broadcast %cst_47 : f32 to vector<8x1xf32>
    %99 = arith.select %96, %97, %98 : vector<8x1xi1>, vector<8x1xf32>
    %100 = vector.broadcast %99 : vector<8x1xf32> to vector<8x8xf32>
    %101 = arith.mulf %92, %100 : vector<8x8xf32>
    %cst_48 = arith.constant dense<0.000000e+00> : vector<8x32xf32>
    %102 = tpu.matmul %101, %69, %cst_48 {dimension_numbers = #tpu.dot_dimension_numbers<[1], [0], [0], [1], [0, 0, 1, 1], [], []>} : vector<8x8xf32>, vector<8x32xf32>, vector<8x32xf32> -> vector<8x32xf32>
    %103 = vector.broadcast %72 : vector<1x32xf32> to vector<8x32xf32>
    %104 = arith.addf %102, %103 : vector<8x32xf32>
    %cst_49 = arith.constant 0.000000e+00 : f32
    %105 = vector.broadcast %cst_49 : f32 to vector<8x32xf32>
    %106 = arith.maximumf %104, %105 : vector<8x32xf32>
    %c88 = arith.constant 88 : index
    %c0_50 = arith.constant 0 : index
    %107 = vector.load %arg4[%c88, %c0_50] : memref<312x32xf32, #tpu.memory_space<vmem>>, vector<32x32xf32>
    %cst_51 = arith.constant dense<0.000000e+00> : vector<8x32xf32>
    %108 = tpu.matmul %106, %107, %cst_51 {dimension_numbers = #tpu.dot_dimension_numbers<[1], [0], [0], [1], [0, 0, 1, 1], [], []>} : vector<8x32xf32>, vector<32x32xf32>, vector<8x32xf32> -> vector<8x32xf32>
    %c4 = arith.constant 4 : index
    %c0_52 = arith.constant 0 : index
    %109 = vector.load %arg5[%c4, %c0_52] : memref<16x32xf32, #tpu.memory_space<vmem>>, vector<1x32xf32>
    %c7 = arith.constant 7 : index
    %c0_53 = arith.constant 0 : index
    %110 = vector.load %arg5[%c7, %c0_53] : memref<16x32xf32, #tpu.memory_space<vmem>>, vector<1x32xf32>
    %c10 = arith.constant 10 : index
    %c0_54 = arith.constant 0 : index
    %111 = vector.load %arg5[%c10, %c0_54] : memref<16x32xf32, #tpu.memory_space<vmem>>, vector<1x32xf32>
    %112 = vector.broadcast %110 : vector<1x32xf32> to vector<8x32xf32>
    %113 = arith.mulf %108, %112 : vector<8x32xf32>
    %cst_55 = arith.constant dense<0.000000e+00> : vector<8xf32>
    %114 = vector.multi_reduction <add>, %113, %cst_55 [1] : vector<8x32xf32> to vector<8xf32>
    %115 = vector.shape_cast %114 : vector<8xf32> to vector<8x1xf32>
    %cst_56 = arith.constant dense<0.000000e+00> : vector<1x8xf32>
    %116 = tpu.matmul %109, %108, %cst_56 {dimension_numbers = #tpu.dot_dimension_numbers<[1], [1], [0], [0], [0, 0, 1, 0], [], []>} : vector<1x32xf32>, vector<8x32xf32>, vector<1x8xf32> -> vector<1x8xf32>
    %117 = vector.broadcast %115 : vector<8x1xf32> to vector<8x8xf32>
    %118 = vector.broadcast %116 : vector<1x8xf32> to vector<8x8xf32>
    %119 = arith.addf %117, %118 : vector<8x8xf32>
    %cst_57 = arith.constant 0.000000e+00 : f32
    %120 = vector.broadcast %cst_57 : f32 to vector<8x8xf32>
    %121 = arith.cmpf ogt, %119, %120 : vector<8x8xf32>
    %cst_58 = arith.constant 2.000000e-01 : f32
    %122 = vector.broadcast %cst_58 : f32 to vector<8x8xf32>
    %123 = arith.mulf %122, %119 : vector<8x8xf32>
    %124 = arith.select %121, %119, %123 : vector<8x8xi1>, vector<8x8xf32>
    %125 = arith.addf %124, %12 : vector<8x8xf32>
    %cst_59 = arith.constant dense<0xFF800000> : vector<8xf32>
    %126 = vector.multi_reduction <maximumf>, %125, %cst_59 [1] : vector<8x8xf32> to vector<8xf32>
    %127 = vector.shape_cast %126 : vector<8xf32> to vector<8x1xf32>
    %128 = vector.broadcast %127 : vector<8x1xf32> to vector<8x8xf32>
    %129 = arith.subf %125, %128 : vector<8x8xf32>
    %130 = math.exp %129 : vector<8x8xf32>
    %131 = arith.mulf %130, %1 : vector<8x8xf32>
    %cst_60 = arith.constant dense<0.000000e+00> : vector<8xf32>
    %132 = vector.multi_reduction <add>, %131, %cst_60 [1] : vector<8x8xf32> to vector<8xf32>
    %133 = vector.shape_cast %132 : vector<8xf32> to vector<8x1xf32>
    %cst_61 = arith.constant 0.000000e+00 : f32
    %134 = vector.broadcast %cst_61 : f32 to vector<8x1xf32>
    %135 = arith.cmpf ogt, %133, %134 : vector<8x1xf32>
    %136 = tpu.reciprocal %133 {approx = true} : vector<8x1xf32> -> vector<8x1xf32>
    %cst_62 = arith.constant 0.000000e+00 : f32
    %137 = vector.broadcast %cst_62 : f32 to vector<8x1xf32>
    %138 = arith.select %135, %136, %137 : vector<8x1xi1>, vector<8x1xf32>
    %139 = vector.broadcast %138 : vector<8x1xf32> to vector<8x8xf32>
    %140 = arith.mulf %131, %139 : vector<8x8xf32>
    %cst_63 = arith.constant dense<0.000000e+00> : vector<8x32xf32>
    %141 = tpu.matmul %140, %108, %cst_63 {dimension_numbers = #tpu.dot_dimension_numbers<[1], [0], [0], [1], [0, 0, 1, 1], [], []>} : vector<8x8xf32>, vector<8x32xf32>, vector<8x32xf32> -> vector<8x32xf32>
    %142 = vector.broadcast %111 : vector<1x32xf32> to vector<8x32xf32>
    %143 = arith.addf %141, %142 : vector<8x32xf32>
    %cst_64 = arith.constant dense<0.000000e+00> : vector<8x32xf32>
    %144 = tpu.matmul %1, %18, %cst_64 {dimension_numbers = #tpu.dot_dimension_numbers<[1], [0], [0], [1], [0, 0, 1, 1], [], []>} : vector<8x8xf32>, vector<8x32xf32>, vector<8x32xf32> -> vector<8x32xf32>
    %c120 = arith.constant 120 : index
    %c0_65 = arith.constant 0 : index
    %145 = vector.load %arg4[%c120, %c0_65] : memref<312x32xf32, #tpu.memory_space<vmem>>, vector<32x32xf32>
    %cst_66 = arith.constant dense<0.000000e+00> : vector<8x32xf32>
    %146 = tpu.matmul %144, %145, %cst_66 {dimension_numbers = #tpu.dot_dimension_numbers<[1], [0], [0], [1], [0, 0, 1, 1], [], []>} : vector<8x32xf32>, vector<32x32xf32>, vector<8x32xf32> -> vector<8x32xf32>
    %c152 = arith.constant 152 : index
    %c0_67 = arith.constant 0 : index
    %147 = vector.load %arg4[%c152, %c0_67] : memref<312x32xf32, #tpu.memory_space<vmem>>, vector<32x32xf32>
    %cst_68 = arith.constant dense<0.000000e+00> : vector<8x32xf32>
    %148 = tpu.matmul %26, %147, %cst_68 {dimension_numbers = #tpu.dot_dimension_numbers<[1], [0], [0], [1], [0, 0, 1, 1], [], []>} : vector<8x32xf32>, vector<32x32xf32>, vector<8x32xf32> -> vector<8x32xf32>
    %149 = arith.addf %146, %148 : vector<8x32xf32>
    %c184 = arith.constant 184 : index
    %c0_69 = arith.constant 0 : index
    %150 = vector.load %arg4[%c184, %c0_69] : memref<312x32xf32, #tpu.memory_space<vmem>>, vector<32x32xf32>
    %cst_70 = arith.constant dense<0.000000e+00> : vector<8x32xf32>
    %151 = tpu.matmul %18, %150, %cst_70 {dimension_numbers = #tpu.dot_dimension_numbers<[1], [0], [0], [1], [0, 0, 1, 1], [], []>} : vector<8x32xf32>, vector<32x32xf32>, vector<8x32xf32> -> vector<8x32xf32>
    %c11 = arith.constant 11 : index
    %c0_71 = arith.constant 0 : index
    %152 = vector.load %arg5[%c11, %c0_71] : memref<16x32xf32, #tpu.memory_space<vmem>>, vector<1x32xf32>
    %153 = vector.broadcast %152 : vector<1x32xf32> to vector<8x32xf32>
    %154 = arith.addf %151, %153 : vector<8x32xf32>
    %c216 = arith.constant 216 : index
    %c0_72 = arith.constant 0 : index
    %155 = vector.load %arg4[%c216, %c0_72] : memref<312x32xf32, #tpu.memory_space<vmem>>, vector<32x32xf32>
    %c12 = arith.constant 12 : index
    %c0_73 = arith.constant 0 : index
    %156 = vector.load %arg5[%c12, %c0_73] : memref<16x32xf32, #tpu.memory_space<vmem>>, vector<1x32xf32>
    %157 = vector.broadcast %7 : vector<8x1xf32> to vector<8x32xf32>
    %158 = arith.mulf %157, %149 : vector<8x32xf32>
    %159 = arith.addf %158, %154 : vector<8x32xf32>
    %cst_74 = arith.constant dense<0.000000e+00> : vector<8x32xf32>
    %160 = tpu.matmul %159, %155, %cst_74 {dimension_numbers = #tpu.dot_dimension_numbers<[1], [0], [0], [1], [0, 0, 1, 1], [], []>} : vector<8x32xf32>, vector<32x32xf32>, vector<8x32xf32> -> vector<8x32xf32>
    %161 = vector.broadcast %156 : vector<1x32xf32> to vector<8x32xf32>
    %162 = arith.addf %160, %161 : vector<8x32xf32>
    %163 = arith.addf %149, %154 : vector<8x32xf32>
    %cst_75 = arith.constant dense<0.000000e+00> : vector<8x32xf32>
    %164 = tpu.matmul %163, %155, %cst_75 {dimension_numbers = #tpu.dot_dimension_numbers<[1], [0], [0], [1], [0, 0, 1, 1], [], []>} : vector<8x32xf32>, vector<32x32xf32>, vector<8x32xf32> -> vector<8x32xf32>
    %165 = vector.broadcast %156 : vector<1x32xf32> to vector<8x32xf32>
    %166 = arith.addf %164, %165 : vector<8x32xf32>
    %cst_76 = arith.constant 0.000000e+00 : f32
    %167 = vector.broadcast %cst_76 : f32 to vector<8x32xf32>
    %168 = arith.maximumf %162, %167 : vector<8x32xf32>
    %c248 = arith.constant 248 : index
    %c0_77 = arith.constant 0 : index
    %169 = vector.load %arg4[%c248, %c0_77] : memref<312x32xf32, #tpu.memory_space<vmem>>, vector<32x32xf32>
    %cst_78 = arith.constant dense<0.000000e+00> : vector<8x32xf32>
    %170 = tpu.matmul %168, %169, %cst_78 {dimension_numbers = #tpu.dot_dimension_numbers<[1], [0], [0], [1], [0, 0, 1, 1], [], []>} : vector<8x32xf32>, vector<32x32xf32>, vector<8x32xf32> -> vector<8x32xf32>
    %cst_79 = arith.constant 0.000000e+00 : f32
    %171 = vector.broadcast %cst_79 : f32 to vector<8x32xf32>
    %172 = arith.maximumf %166, %171 : vector<8x32xf32>
    %c280 = arith.constant 280 : index
    %c0_80 = arith.constant 0 : index
    %173 = vector.load %arg4[%c280, %c0_80] : memref<312x32xf32, #tpu.memory_space<vmem>>, vector<32x32xf32>
    %cst_81 = arith.constant dense<0.000000e+00> : vector<8x32xf32>
    %174 = tpu.matmul %172, %173, %cst_81 {dimension_numbers = #tpu.dot_dimension_numbers<[1], [0], [0], [1], [0, 0, 1, 1], [], []>} : vector<8x32xf32>, vector<32x32xf32>, vector<8x32xf32> -> vector<8x32xf32>
    %175 = arith.addf %170, %174 : vector<8x32xf32>
    %c13 = arith.constant 13 : index
    %c0_82 = arith.constant 0 : index
    %176 = vector.load %arg5[%c13, %c0_82] : memref<16x32xf32, #tpu.memory_space<vmem>>, vector<1x32xf32>
    %c14 = arith.constant 14 : index
    %c0_83 = arith.constant 0 : index
    %177 = vector.load %arg5[%c14, %c0_83] : memref<16x32xf32, #tpu.memory_space<vmem>>, vector<1x32xf32>
    %c15 = arith.constant 15 : index
    %c0_84 = arith.constant 0 : index
    %178 = vector.load %arg5[%c15, %c0_84] : memref<16x32xf32, #tpu.memory_space<vmem>>, vector<1x32xf32>
    %179 = vector.broadcast %177 : vector<1x32xf32> to vector<8x32xf32>
    %180 = arith.mulf %175, %179 : vector<8x32xf32>
    %cst_85 = arith.constant dense<0.000000e+00> : vector<8xf32>
    %181 = vector.multi_reduction <add>, %180, %cst_85 [1] : vector<8x32xf32> to vector<8xf32>
    %182 = vector.shape_cast %181 : vector<8xf32> to vector<8x1xf32>
    %cst_86 = arith.constant dense<0.000000e+00> : vector<1x8xf32>
    %183 = tpu.matmul %176, %175, %cst_86 {dimension_numbers = #tpu.dot_dimension_numbers<[1], [1], [0], [0], [0, 0, 1, 0], [], []>} : vector<1x32xf32>, vector<8x32xf32>, vector<1x8xf32> -> vector<1x8xf32>
    %184 = vector.broadcast %182 : vector<8x1xf32> to vector<8x8xf32>
    %185 = vector.broadcast %183 : vector<1x8xf32> to vector<8x8xf32>
    %186 = arith.addf %184, %185 : vector<8x8xf32>
    %cst_87 = arith.constant 0.000000e+00 : f32
    %187 = vector.broadcast %cst_87 : f32 to vector<8x8xf32>
    %188 = arith.cmpf ogt, %186, %187 : vector<8x8xf32>
    %cst_88 = arith.constant 2.000000e-01 : f32
    %189 = vector.broadcast %cst_88 : f32 to vector<8x8xf32>
    %190 = arith.mulf %189, %186 : vector<8x8xf32>
    %191 = arith.select %188, %186, %190 : vector<8x8xi1>, vector<8x8xf32>
    %192 = arith.addf %191, %12 : vector<8x8xf32>
    %cst_89 = arith.constant dense<0xFF800000> : vector<8xf32>
    %193 = vector.multi_reduction <maximumf>, %192, %cst_89 [1] : vector<8x8xf32> to vector<8xf32>
    %194 = vector.shape_cast %193 : vector<8xf32> to vector<8x1xf32>
    %195 = vector.broadcast %194 : vector<8x1xf32> to vector<8x8xf32>
    %196 = arith.subf %192, %195 : vector<8x8xf32>
    %197 = math.exp %196 : vector<8x8xf32>
    %198 = arith.mulf %197, %1 : vector<8x8xf32>
    %cst_90 = arith.constant dense<0.000000e+00> : vector<8xf32>
    %199 = vector.multi_reduction <add>, %198, %cst_90 [1] : vector<8x8xf32> to vector<8xf32>
    %200 = vector.shape_cast %199 : vector<8xf32> to vector<8x1xf32>
    %cst_91 = arith.constant 0.000000e+00 : f32
    %201 = vector.broadcast %cst_91 : f32 to vector<8x1xf32>
    %202 = arith.cmpf ogt, %200, %201 : vector<8x1xf32>
    %203 = tpu.reciprocal %200 {approx = true} : vector<8x1xf32> -> vector<8x1xf32>
    %cst_92 = arith.constant 0.000000e+00 : f32
    %204 = vector.broadcast %cst_92 : f32 to vector<8x1xf32>
    %205 = arith.select %202, %203, %204 : vector<8x1xi1>, vector<8x1xf32>
    %206 = vector.broadcast %205 : vector<8x1xf32> to vector<8x8xf32>
    %207 = arith.mulf %198, %206 : vector<8x8xf32>
    %cst_93 = arith.constant dense<0.000000e+00> : vector<8x32xf32>
    %208 = tpu.matmul %207, %175, %cst_93 {dimension_numbers = #tpu.dot_dimension_numbers<[1], [0], [0], [1], [0, 0, 1, 1], [], []>} : vector<8x8xf32>, vector<8x32xf32>, vector<8x32xf32> -> vector<8x32xf32>
    %209 = vector.broadcast %178 : vector<1x32xf32> to vector<8x32xf32>
    %210 = arith.addf %208, %209 : vector<8x32xf32>
    %c0_94 = arith.constant 0 : index
    %c0_95 = arith.constant 0 : index
    %211 = vector.load %arg7[%c0_94, %c0_95] : memref<1x4xf32, #tpu.memory_space<vmem>>, vector<1x4xf32>
    %c0_96 = arith.constant 0 : index
    %c0_97 = arith.constant 0 : index
    %212 = vector.load %arg6[%c0_96, %c0_97] : memref<192x4xf32, #tpu.memory_space<vmem>>, vector<32x4xf32>
    %cst_98 = arith.constant dense<0.000000e+00> : vector<8x4xf32>
    %213 = tpu.matmul %65, %212, %cst_98 {dimension_numbers = #tpu.dot_dimension_numbers<[1], [0], [0], [1], [0, 0, 1, 1], [], []>} : vector<8x32xf32>, vector<32x4xf32>, vector<8x4xf32> -> vector<8x4xf32>
    %214 = vector.broadcast %211 : vector<1x4xf32> to vector<8x4xf32>
    %215 = arith.addf %214, %213 : vector<8x4xf32>
    %c32 = arith.constant 32 : index
    %c0_99 = arith.constant 0 : index
    %216 = vector.load %arg6[%c32, %c0_99] : memref<192x4xf32, #tpu.memory_space<vmem>>, vector<32x4xf32>
    %cst_100 = arith.constant dense<0.000000e+00> : vector<8x4xf32>
    %217 = tpu.matmul %104, %216, %cst_100 {dimension_numbers = #tpu.dot_dimension_numbers<[1], [0], [0], [1], [0, 0, 1, 1], [], []>} : vector<8x32xf32>, vector<32x4xf32>, vector<8x4xf32> -> vector<8x4xf32>
    %218 = arith.addf %215, %217 : vector<8x4xf32>
    %c64 = arith.constant 64 : index
    %c0_101 = arith.constant 0 : index
    %219 = vector.load %arg6[%c64, %c0_101] : memref<192x4xf32, #tpu.memory_space<vmem>>, vector<32x4xf32>
    %cst_102 = arith.constant dense<0.000000e+00> : vector<8x4xf32>
    %220 = tpu.matmul %143, %219, %cst_102 {dimension_numbers = #tpu.dot_dimension_numbers<[1], [0], [0], [1], [0, 0, 1, 1], [], []>} : vector<8x32xf32>, vector<32x4xf32>, vector<8x4xf32> -> vector<8x4xf32>
    %221 = arith.addf %218, %220 : vector<8x4xf32>
    %c96 = arith.constant 96 : index
    %c0_103 = arith.constant 0 : index
    %222 = vector.load %arg6[%c96, %c0_103] : memref<192x4xf32, #tpu.memory_space<vmem>>, vector<32x4xf32>
    %cst_104 = arith.constant dense<0.000000e+00> : vector<8x4xf32>
    %223 = tpu.matmul %162, %222, %cst_104 {dimension_numbers = #tpu.dot_dimension_numbers<[1], [0], [0], [1], [0, 0, 1, 1], [], []>} : vector<8x32xf32>, vector<32x4xf32>, vector<8x4xf32> -> vector<8x4xf32>
    %224 = arith.addf %221, %223 : vector<8x4xf32>
    %c128 = arith.constant 128 : index
    %c0_105 = arith.constant 0 : index
    %225 = vector.load %arg6[%c128, %c0_105] : memref<192x4xf32, #tpu.memory_space<vmem>>, vector<32x4xf32>
    %cst_106 = arith.constant dense<0.000000e+00> : vector<8x4xf32>
    %226 = tpu.matmul %166, %225, %cst_106 {dimension_numbers = #tpu.dot_dimension_numbers<[1], [0], [0], [1], [0, 0, 1, 1], [], []>} : vector<8x32xf32>, vector<32x4xf32>, vector<8x4xf32> -> vector<8x4xf32>
    %227 = arith.addf %224, %226 : vector<8x4xf32>
    %c160 = arith.constant 160 : index
    %c0_107 = arith.constant 0 : index
    %228 = vector.load %arg6[%c160, %c0_107] : memref<192x4xf32, #tpu.memory_space<vmem>>, vector<32x4xf32>
    %cst_108 = arith.constant dense<0.000000e+00> : vector<8x4xf32>
    %229 = tpu.matmul %210, %228, %cst_108 {dimension_numbers = #tpu.dot_dimension_numbers<[1], [0], [0], [1], [0, 0, 1, 1], [], []>} : vector<8x32xf32>, vector<32x4xf32>, vector<8x4xf32> -> vector<8x4xf32>
    %230 = arith.addf %227, %229 : vector<8x4xf32>
    %231 = arith.negf %230 : vector<8x4xf32>
    %232 = math.exp %231 : vector<8x4xf32>
    %cst_109 = arith.constant 1.000000e+00 : f32
    %233 = vector.broadcast %cst_109 : f32 to vector<8x4xf32>
    %234 = arith.addf %233, %232 : vector<8x4xf32>
    %235 = arith.divf %233, %234 : vector<8x4xf32>
    %c0_110 = arith.constant 0 : index
    %c0_111 = arith.constant 0 : index
    %236 = vector.load %arg8[%c0_110, %c0_111] : memref<8x4xf32, #tpu.memory_space<vmem>>, vector<8x4xf32>
    tpu.vector_store %arg8[%c0_110, %c0_111], %235 {strides = array<i32>} : memref<8x4xf32, #tpu.memory_space<vmem>>, vector<8x4xf32>,
    return
  }
}

</mosaic_0001>

<bundles_post_ra>
// kernel: net2a_forward.1
= control target key start
LH: loop header
LB: loop body
LE: loop exit
PB: predicated region body
PF: predicated region fallthrough
CT: control target
= control target key end

     0   :  { %v2713_v0 = vmov 0.0   ;;  %vm2714_vm0 = vmmov 0   ;;  %vm45_vm1 = vcmask 130048   ;;  %vm132_vm2 = vcmask 64512   ;;  %s3241_s4 = inlined_call_operand.vmem [shape: f32[312,32], index: 4, kind: input, shape index: {}]   ;;  %s3242_s0 = inlined_call_operand.vmem [shape: f32[8,16], index: 0, kind: input, shape index: {}]   ;;  %s3243_s1 = inlined_call_operand.vmem [shape: f32[8,8], index: 1, kind: input, shape index: {}]   ;;  %s3244_s5 = inlined_call_operand.vmem [shape: f32[16,32], index: 5, kind: input, shape index: {}]   ;;  %s3245_s2 = inlined_call_operand.vmem [shape: bf16[8,8], index: 2, kind: input, shape index: {}]   ;;  %s3246_s3 = inlined_call_operand.vmem [shape: f32[8,1], index: 3, kind: input, shape index: {}]   ;;  %s3247_s6 = inlined_call_operand.vmem [shape: f32[192,4], index: 6, kind: input, shape index: {}]   ;;  %s3248_s7 = inlined_call_operand.vmem [shape: f32[1,4], index: 7, kind: input, shape index: {}]   ;;  %s3249_s8 = inlined_call_operand.vmem [shape: f32[8,4], index: 8, kind: output, shape index: {}]  }
   0x1   :  { %2452 = vmatprep.subr.mxu0 %v2713_v0  ;;  %v39_v1 = vld [vmem:[%s3241_s4 + $0x8] sm:$0xff]  ;;  %v38_v2 = vld [vmem:[%s3241_s4] sm:$0xff]  ;;  %2456 = vmatprep.mubr.msk.f32.mxu0 %vm2714_vm0, %v2713_v0  ;;  %v120_v4 = vld [vmem:[%s3241_s4 + $0x10] sm:$0xff]  ;;  %vm211_vm3 = vcmask 261120   ;;  %v372_v23 = vlaneseq  ;;  %v2715_v34 = vmov -1e+30  }
   0x2   :  { %2453 = vmatpush3.msra.mxu0 %v39_v1  ;;  %v37_v3 = vld [vmem:[%s3242_s0] sm:$0xff]  ;;  %2459 = vmatprep.subr.mxu1 %v2713_v0  ;;  %v210_v6 = vld [vmem:[%s3241_s4 + $0x30] sm:$0xff]  ;;  %v209_v7 = vld [vmem:[%s3241_s4 + $0x28] sm:$0xff]  ;;  %vm2298_vm14 = vcmask 31744  }
   0x3   :  { %v119_v5 = vld [vmem:[%s3243_s1] sm:$0xff]  ;;  %2454 = vmatprep.subr.mxu0 %v2713_v0  ;;  %2460 = vmatpush3.msra.mxu1 %v120_v4  ;;  %v207_v9 = vld [vmem:[%s3241_s4 + $0x18] sm:$0xff]  ;;  %v373_v24 = vshrl.u32 %v372_v23, 7  ;;  %v476_v45 = vld [vmem:[%s3241_s4 + $0x50] sm:$0xff] }
   0x4   :  { %2455 = vmatpush3.msra.mxu0 %v38_v2  ;;  %2461 = vmatprep.mubr.msk.f32.mxu1 %vm2714_vm0, %v2713_v0  ;;  %v208_v8 = vld [vmem:[%s3241_s4 + $0x20] sm:$0xff]  ;;  %v475_v50 = vld [vmem:[%s3241_s4 + $0x48] sm:$0xff]  ;;  %v473_v52 = vld [vmem:[%s3241_s4 + $0x38] sm:$0xff] }
   0x5   :  { %2457 = vmatmul.mubr.msk.f32.vlgmr.msra.gmra.mxu0 %vm45_vm1, %v37_v3  ;;  %2462 = vmatmul.mubr.msk.f32.vlgmr.msra.gmra.mxu1 %vm132_vm2, %v119_v5  ;;  %v2304_v10 = vld [vmem:[%s3244_s5] ss:$0 sm:$0xff]  ;;  %v2309_v17 = vld [vmem:[%s3244_s5 + $0x5] ss:$0 sm:$0xff]  ;;  %v285_v19 = vld [vmem:[%s3244_s5 + $0x2] sm:$0x1] }
   0x6   :  { %2464 = vmatprep.subr.mxu1 %v2713_v0  ;;  %2472 = vmatprep.mubr.msk.f32.mxu1 %vm2714_vm0, %v2713_v0  ;;  %v29_v25 = vld [vmem:[%s3245_s2] sm:$0xf]  ;;  %v2834_v26 = vsub.s32 0, %v373_v24  ;;  %v2312_v53 = vld [vmem:[%s3244_s5 + $0x8] ss:$0 sm:$0xff] }
   0x7   :  { %2465 = vmatpush3.msra.mxu1 %v210_v6  ;;  %2475 = vmatprep.subr.mxu0 %v2713_v0  ;;  %v2836_v27 = vunpack.c.l.bf16 %v29_v25  ;;  %v474_v51 = vld [vmem:[%s3241_s4 + $0x40] sm:$0xff]  ;;  %v738_v25 = vld [vmem:[%s3241_s4 + $0x58] sm:$0xff] }
   0x8   :  { %2466 = vmatprep.subr.mxu1 %v2713_v0  ;;  %2477 = vmatprep.mubr.msk.f32.mxu0 %vm2714_vm0, %v2713_v0  ;;  %v2315_v58 = vld [vmem:[%s3244_s5 + $0x6] ss:$0 sm:$0xff]  ;;  %v550_v60 = vld [vmem:[%s3244_s5 + $0x3] sm:$0x1] }
   0x9   :  { %2467 = vmatpush3.msra.mxu1 %v209_v7  ;;  %vm35_vm4 = vcmp.gt.f32.partialorder %v2836_v27, 0.0  ;;  %v739_v24 = vld [vmem:[%s3241_s4 + $0x60] sm:$0xff] }
   0xa   :  { %2468 = vmatprep.subr.mxu1 %v2713_v0  ;;  %v2840_v35 = vsel %vm35_vm4, 0.0, %v2715_v34 }
   0xb   :  { %2469 = vmatpush3.msra.mxu1 %v208_v8 }
   0xc   :  { %2470 = vmatprep.subr.mxu1 %v2713_v0 }
   0xd   :  { %2471 = vmatpush3.msra.mxu1 %v207_v9 }
   0xe   :  { %2485 = vmatprep.subr.mxu1 %v2713_v0 }
  0xc5   :  { %v115_v11 = vpop.f32.mrf.mxu0  ;;  %v2810_v12 = vpop.f32.mrf.mxu1 }
  0xc6   :  { %v2812_v13 = vadd.f32 %v2304_v10, %v115_v11 }
  0xc7   :  { %v2458_v14 = vpop.f32.mrf.mxu0  ;;  %v2463_v15 = vpop.f32.mrf.mxu1 }
  0xc8   :  { %v206_v16 = vmax.f32 %v2812_v13, 0.0 }
  0xca   :  { %2473 = vmatmul.mubr.msk.f32.vlgmr.msra.gmra.mxu1 %vm211_vm3, %v206_v16 }
  0xcb   :  { %2493 = vmatprep.mubr.msk.f32.mxu1 %vm2714_vm0, %v2713_v0  ;;  %2486 = vmatpush3.msra.mxu1 %v476_v45 }
  0xcc   :  { %2487 = vmatprep.subr.mxu1 %v2713_v0 }
  0xcd   :  { %2488 = vmatpush3.msra.mxu1 %v475_v50  ;;  %v31_v50 = vld [vmem:[%s3246_s3] sm:$0xff] }
  0xce   :  { %2489 = vmatprep.subr.mxu1 %v2713_v0  ;;  %vm32_vm10 = vcmp.gt.f32.partialorder %v31_v50, 0.0 }
  0xcf   :  { %2490 = vmatpush3.msra.mxu1 %v474_v51 }
  0xd0   :  { %2491 = vmatprep.subr.mxu1 %v2713_v0 }
  0xd1   :  { %2492 = vmatpush3.msra.mxu1 %v473_v52 }
  0xd2   :  { %2506 = vmatprep.subr.mxu1 %v2713_v0 }
 0x18a   :  { %v281_v18 = vpop.f32.mrf.mxu1 }
 0x18b   :  { %2476 = vmatpush3.xpose.msk.msra.mxu0 %vm211_vm3, %v281_v18  ;;  %v292_v20 = vmul.f32 %v2309_v17, %v281_v18 }
 0x18c   :  { %v2474_v21 = vpop.f32.mrf.mxu1  ;;  %2480 = vmatprep.subr.mxu0 %v2713_v0 }
 0x18d   :  { %v293_v22 = vsel %vm211_vm3, %v292_v20, 0.0 }
 0x18e   :  { %2478 = vmatmul.mubr.msk.f32.vlgmr.msra.gmra.mxu0 %vm211_vm3, %v285_v19  ;;  %294 = vadd.xlane.f32.xlu0 %v293_v22  ;;  %v740_v19 = vld [vmem:[%s3241_s4 + $0x68] sm:$0xff] }
 0x18f   :  { %2481 = vmatpush3.msra.mxu0 %v281_v18  ;;  %2482 = vmatprep.mubr.msk.f32.mxu0 %vm2714_vm0, %v2713_v0  ;;  %v741_v18 = vld [vmem:[%s3241_s4 + $0x70] sm:$0xff] }
 0x190   :  { %2496 = vmatprep.subr.mxu0 %v2713_v0 }
 0x217   :  { %v295_v30 = vpop.xlane.xlu0 %294 }
 0x24e   :  { %v368_v28 = vpop.f32.mrf.mxu0 }
 0x24f   :  { %v375_v29 = vrot.slane %v368_v28, %v2834_v26  ;;  %v2318_v28 = vld [vmem:[%s3244_s5 + $0x9] ss:$0 sm:$0xff] }
 0x250   :  { %v2479_v31 = vpop.f32.mrf.mxu0 }
 0x251   :  { %v376_v32 = vadd.f32 %v375_v29, %v295_v30 }
 0x253   :  { %v378_v33 = vmul.f32 0.2, %v376_v32  ;;  %vm377_vm5 = vcmp.gt.f32.partialorder %v376_v32, 0.0 }
 0x255   :  { %v379_v36 = vsel %vm377_vm5, %v376_v32, %v378_v33  ;;  %v2321_v33 = vld [vmem:[%s3244_s5 + $0x7] ss:$0 sm:$0xff] }
 0x256   :  { %v380_v37 = vadd.f32 %v379_v36, %v2840_v35  ;;  %v815_v36 = vld [vmem:[%s3244_s5 + $0x4] sm:$0x1] }
 0x258   :  { %v381_v38 = vsel %vm132_vm2, %v380_v37, -inf }
 0x259   :  { %382 = vmax.xlane.f32.xlu0 %v381_v38 }
 0x2e2   :  { %v383_v39 = vpop.xlane.xlu0 %382 }
 0x2e3   :  { %v384_v40 = vsub.f32 %v380_v37, %v383_v39 }
 0x2e5   :  { %v385_v41 = vmul.f32 1.442695, %v384_v40  ;;  %v2716_v40 = vmov 0  }
 0x2e6   :  { %2689 = vset.pattern.permute.xlu1 %v2716_v40  ;;  %2690 = vset.pattern.permute.xlu0 %v2716_v40 }
 0x2e7   :  { %2691 = vpow2.f32 %v385_v41 }
 0x2f4   :  { %v2692_v42 = vpop.eup %2691 }
 0x2f5   :  { %v387_v43 = vmul.f32 %v2692_v42, %v2836_v27 }
 0x2f7   :  { %v388_v44 = vsel %vm132_vm2, %v387_v43, 0.0 }
 0x2f8   :  { %389 = vadd.xlane.f32.xlu1 %v388_v44 }
 0x381   :  { %v390_v46 = vpop.xlane.xlu1 %389 }
 0x382   :  { %2693 = vrcp.f32 %v390_v46  ;;  %vm391_vm6 = vcmp.gt.f32.partialorder %v390_v46, 0.0 }
 0x38f   :  { %v2694_v47 = vpop.eup %2693 }
 0x390   :  { %v393_v48 = vsel %vm391_vm6, %v2694_v47, 0.0 }
 0x391   :  { %v394_v49 = vmul.f32 %v393_v48, %v387_v43 }
 0x393   :  { %2483 = vmatmul.mubr.msk.f32.vlgmr.msra.gmra.mxu0 %vm132_vm2, %v394_v49 }
 0x394   :  { %2498 = vmatprep.mubr.msk.f32.mxu0 %vm2714_vm0, %v2713_v0 }
 0x453   :  { %v468_v54 = vpop.f32.mrf.mxu0 }
 0x454   :  { %v2868_v55 = vadd.f32 %v2312_v53, %v468_v54 }
 0x455   :  { %v2484_v56 = vpop.f32.mrf.mxu0 }
 0x456   :  { %v472_v57 = vmax.f32 %v2868_v55, 0.0 }
 0x458   :  { %2494 = vmatmul.mubr.msk.f32.vlgmr.msra.gmra.mxu1 %vm211_vm3, %v472_v57 }
 0x459   :  { %2514 = vmatprep.mubr.msk.f32.mxu1 %vm2714_vm0, %v2713_v0  ;;  %2507 = vmatpush3.msra.mxu1 %v741_v18  ;;  %v1231_v18 = vld [vmem:[%s3241_s4 + $0xc8] sm:$0xff] }
 0x45a   :  { %2508 = vmatprep.subr.mxu1 %v2713_v0 }
 0x45b   :  { %2509 = vmatpush3.msra.mxu1 %v740_v19  ;;  %v1229_v19 = vld [vmem:[%s3241_s4 + $0xb8] sm:$0xff] }
 0x45c   :  { %2510 = vmatprep.subr.mxu1 %v2713_v0 }
 0x45d   :  { %2511 = vmatpush3.msra.mxu1 %v739_v24  ;;  %v1311_v24 = vld [vmem:[%s3241_s4 + $0xd8] sm:$0xff] }
 0x45e   :  { %2512 = vmatprep.subr.mxu1 %v2713_v0 }
 0x45f   :  { %2513 = vmatpush3.msra.mxu1 %v738_v25 }
 0x460   :  { %2527 = vmatprep.subr.mxu1 %v2713_v0 }
 0x518   :  { %v546_v59 = vpop.f32.mrf.mxu1 }
 0x519   :  { %2497 = vmatpush3.xpose.msk.msra.mxu0 %vm211_vm3, %v546_v59  ;;  %v557_v61 = vmul.f32 %v2315_v58, %v546_v59  ;;  %v1078_v58 = vld [vmem:[%s3241_s4 + $0x90] sm:$0xff] }
 0x51a   :  { %v2495_v62 = vpop.f32.mrf.mxu1  ;;  %2501 = vmatprep.subr.mxu0 %v2713_v0 }
 0x51b   :  { %v558_v63 = vsel %vm211_vm3, %v557_v61, 0.0  ;;  %v1075_v62 = vld [vmem:[%s3241_s4 + $0x78] sm:$0xff] }
 0x51c   :  { %2499 = vmatmul.mubr.msk.f32.vlgmr.msra.gmra.mxu0 %vm211_vm3, %v550_v60  ;;  %559 = vadd.xlane.f32.xlu1 %v558_v63  ;;  %v1076_v60 = vld [vmem:[%s3241_s4 + $0x80] sm:$0xff] }
 0x51d   :  { %2502 = vmatpush3.msra.mxu0 %v546_v59  ;;  %2503 = vmatprep.mubr.msk.f32.mxu0 %vm2714_vm0, %v2713_v0  ;;  %v1077_v59 = vld [vmem:[%s3241_s4 + $0x88] sm:$0xff] }
 0x51e   :  { %2517 = vmatprep.subr.mxu0 %v2713_v0 }
 0x5a5   :  { %v560_v3 = vpop.xlane.xlu1 %559 }
 0x5dc   :  { %v633_v1 = vpop.f32.mrf.mxu0 }
 0x5dd   :  { %v640_v2 = vrot.slane %v633_v1, %v2834_v26 }
 0x5de   :  { %v2500_v4 = vpop.f32.mrf.mxu0 }
 0x5df   :  { %v641_v5 = vadd.f32 %v640_v2, %v560_v3 }
 0x5e1   :  { %v643_v6 = vmul.f32 0.2, %v641_v5  ;;  %vm642_vm7 = vcmp.gt.f32.partialorder %v641_v5, 0.0 }
 0x5e3   :  { %v644_v7 = vsel %vm642_vm7, %v641_v5, %v643_v6 }
 0x5e4   :  { %v645_v8 = vadd.f32 %v644_v7, %v2840_v35  ;;  %v1082_v7 = vld [vmem:[%s3241_s4 + $0xb0] sm:$0xff] }
 0x5e6   :  { %v646_v9 = vsel %vm132_vm2, %v645_v8, -inf }
 0x5e7   :  { %647 = vmax.xlane.f32.xlu0 %v646_v9 }
 0x670   :  { %v648_v10 = vpop.xlane.xlu0 %647 }
 0x671   :  { %v649_v11 = vsub.f32 %v645_v8, %v648_v10  ;;  %v2306_v8 = vld [vmem:[%s3244_s5 + $0x1] ss:$0 sm:$0xff]  ;;  %v1081_v10 = vld [vmem:[%s3241_s4 + $0xa8] sm:$0xff] }
 0x673   :  { %v650_v14 = vmul.f32 1.442695, %v649_v11 }
 0x675   :  { %2695 = vpow2.f32 %v650_v14  ;;  %v1080_v14 = vld [vmem:[%s3241_s4 + $0xa0] sm:$0xff] }
 0x682   :  { %v2696_v15 = vpop.eup %2695 }
 0x683   :  { %v652_v16 = vmul.f32 %v2696_v15, %v2836_v27  ;;  %v1079_v15 = vld [vmem:[%s3241_s4 + $0x98] sm:$0xff] }
 0x685   :  { %v653_v17 = vsel %vm132_vm2, %v652_v16, 0.0 }
 0x686   :  { %654 = vadd.xlane.f32.xlu1 %v653_v17  ;;  %v1232_v17 = vld [vmem:[%s3241_s4 + $0xd0] sm:$0xff] }
 0x70f   :  { %v655_v20 = vpop.xlane.xlu1 %654 }
 0x710   :  { %2697 = vrcp.f32 %v655_v20  ;;  %vm656_vm8 = vcmp.gt.f32.partialorder %v655_v20, 0.0 }
 0x71d   :  { %v2698_v21 = vpop.eup %2697 }
 0x71e   :  { %v658_v22 = vsel %vm656_vm8, %v2698_v21, 0.0 }
 0x71f   :  { %v659_v23 = vmul.f32 %v658_v22, %v652_v16  ;;  %v1314_v22 = vld [vmem:[%s3241_s4 + $0xf0] sm:$0xff] }
 0x721   :  { %2504 = vmatmul.mubr.msk.f32.vlgmr.msra.gmra.mxu0 %vm132_vm2, %v659_v23  ;;  %v1312_v23 = vld [vmem:[%s3241_s4 + $0xe0] sm:$0xff] }
 0x722   :  { %2519 = vmatprep.mubr.msk.f32.mxu0 %vm2714_vm0, %v2713_v0 }
 0x7e1   :  { %v733_v29 = vpop.f32.mrf.mxu0 }
 0x7e2   :  { %v2914_v30 = vadd.f32 %v2318_v28, %v733_v29 }
 0x7e3   :  { %v2505_v31 = vpop.f32.mrf.mxu0 }
 0x7e4   :  { %v737_v32 = vmax.f32 %v2914_v30, 0.0 }
 0x7e6   :  { %2515 = vmatmul.mubr.msk.f32.vlgmr.msra.gmra.mxu1 %vm211_vm3, %v737_v32 }
 0x7e7   :  { %2528 = vmatpush3.msra.mxu1 %v2812_v13  ;;  %2529 = vmatprep.mubr.msk.f32.mxu1 %vm2714_vm0, %v2713_v0 }
 0x7e8   :  { %2543 = vmatprep.subr.mxu1 %v2713_v0 }
 0x7ea   :  { %2530 = vmatmul.mubr.msk.f32.vlgmr.msra.gmra.mxu1 %vm132_vm2, %v2836_v27 }
 0x7eb   :  { %2551 = vmatprep.mubr.msk.f32.mxu1 %vm2714_vm0, %v2713_v0  ;;  %2544 = vmatpush3.msra.mxu1 %v1078_v58 }
 0x7ec   :  { %2545 = vmatprep.subr.mxu1 %v2713_v0 }
 0x7ed   :  { %2546 = vmatpush3.msra.mxu1 %v1077_v59 }
 0x7ee   :  { %2547 = vmatprep.subr.mxu1 %v2713_v0 }
 0x7ef   :  { %2548 = vmatpush3.msra.mxu1 %v1076_v60  ;;  %v1821_v60 = vld [vmem:[%s3247_s6 + $0x18] sm:$0xff] }
 0x7f0   :  { %2549 = vmatprep.subr.mxu1 %v2713_v0 }
 0x7f1   :  { %2550 = vmatpush3.msra.mxu1 %v1075_v62  ;;  %v1819_v62 = vld [vmem:[%s3247_s6 + $0x8] sm:$0xff] }
 0x7f2   :  { %2565 = vmatprep.subr.mxu1 %v2713_v0 }
 0x8a6   :  { %v811_v34 = vpop.f32.mrf.mxu1 }
 0x8a7   :  { %2518 = vmatpush3.xpose.msk.msra.mxu0 %vm211_vm3, %v811_v34  ;;  %v822_v37 = vmul.f32 %v2321_v33, %v811_v34 }
 0x8a8   :  { %v2516_v38 = vpop.f32.mrf.mxu1  ;;  %2522 = vmatprep.subr.mxu0 %v2713_v0 }
 0x8a9   :  { %v823_v39 = vsel %vm211_vm3, %v822_v37, 0.0 }
 0x8aa   :  { %2520 = vmatmul.mubr.msk.f32.vlgmr.msra.gmra.mxu0 %vm211_vm3, %v815_v36  ;;  %824 = vadd.xlane.f32.xlu0 %v823_v39  ;;  %v1071_v61 = vpop.f32.mrf.mxu1 }
 0x8ab   :  { %2523 = vmatpush3.msra.mxu0 %v811_v34  ;;  %2524 = vmatprep.mubr.msk.f32.mxu0 %vm2714_vm0, %v2713_v0  ;;  %v2329_v34 = vld [vmem:[%s3244_s5 + $0xb] ss:$0 sm:$0xff] }
 0x8ac   :  { %2532 = vmatprep.subr.mxu0 %v2713_v0  ;;  %2552 = vmatmul.mubr.msk.f32.vlgmr.msra.gmra.mxu1 %vm211_vm3, %v1071_v61  ;;  %v2531_v63 = vpop.f32.mrf.mxu1  ;;  %v1820_v61 = vld [vmem:[%s3247_s6 + $0x10] sm:$0xff] }
 0x8ad   :  { %2573 = vmatprep.mubr.msk.f32.mxu1 %vm2714_vm0, %v2713_v0  ;;  %2566 = vmatpush3.msra.mxu1 %v1314_v22  ;;  %v1818_v63 = vld [vmem:[%s3247_s6] sm:$0xff] }
 0x8ae   :  { %2567 = vmatprep.subr.mxu1 %v2713_v0 }
 0x933   :  { %v825_v43 = vpop.xlane.xlu0 %824 }
 0x96a   :  { %v898_v41 = vpop.f32.mrf.mxu0 }
 0x96b   :  { %v905_v42 = vrot.slane %v898_v41, %v2834_v26 }
 0x96c   :  { %v2521_v44 = vpop.f32.mrf.mxu0  ;;  %v1225_v20 = vpop.f32.mrf.mxu1 }
 0x96d   :  { %v906_v45 = vadd.f32 %v905_v42, %v825_v43  ;;  %v1478_v42 = vld [vmem:[%s3241_s4 + $0x110] sm:$0xff]  ;;  %v1477_v44 = vld [vmem:[%s3241_s4 + $0x108] sm:$0xff] }
 0x96e   :  { %v2553_v21 = vpop.f32.mrf.mxu1  ;;  %v1483_v43 = vld [vmem:[%s3241_s4 + $0x130] sm:$0xff] }
 0x96f   :  { %v908_v46 = vmul.f32 0.2, %v906_v45  ;;  %vm907_vm9 = vcmp.gt.f32.partialorder %v906_v45, 0.0 }
 0x971   :  { %v909_v47 = vsel %vm907_vm9, %v906_v45, %v908_v46  ;;  %v1482_v45 = vld [vmem:[%s3241_s4 + $0x128] sm:$0xff]  ;;  %v1476_v46 = vld [vmem:[%s3241_s4 + $0x100] sm:$0xff] }
 0x972   :  { %v910_v48 = vadd.f32 %v909_v47, %v2840_v35  ;;  %v1481_v47 = vld [vmem:[%s3241_s4 + $0x120] sm:$0xff] }
 0x974   :  { %v911_v49 = vsel %vm132_vm2, %v910_v48, -inf }
 0x975   :  { %912 = vmax.xlane.f32.xlu1 %v911_v49  ;;  %v1480_v49 = vld [vmem:[%s3241_s4 + $0x118] sm:$0xff] }
 0x986   :  { %124 = vperm.xlu1 %2689, %v31_v50  }
 0x9fe   :  { %v913_v51 = vpop.xlane.xlu1 %912 }
 0x9ff   :  { %v914_v52 = vsub.f32 %v910_v48, %v913_v51  ;;  %v1475_v48 = vld [vmem:[%s3241_s4 + $0xf8] sm:$0xff] }
 0xa01   :  { %v915_v53 = vmul.f32 1.442695, %v914_v52 }
 0xa02   :  { %v125_v9 = vpop.permute.xlu1 %124 }
 0xa03   :  { %2699 = vpow2.f32 %v915_v53  ;;  %v131_v11 = vmul.f32 %v2306_v8, %v125_v9  ;;  %v2137_v8 = vld [vmem:[%s3247_s6 + $0x88] sm:$0xff]  ;;  %v2136_v9 = vld [vmem:[%s3247_s6 + $0x80] sm:$0xff] }
 0xa04   :  { %2701 = vrcp.f32 %v31_v50  ;;  %v2331_v50 = vld [vmem:[%s3244_s5 + $0xc] ss:$0 sm:$0xff] }
 0xa05   :  { %v203_v16 = vadd.f32 %v2810_v12, %v131_v11  ;;  %v1230_v12 = vld [vmem:[%s3241_s4 + $0xc0] sm:$0xff] }
 0xa10   :  { %v2700_v54 = vpop.eup %2699 }
 0xa11   :  { %v917_v56 = vmul.f32 %v2700_v54, %v2836_v27  ;;  %v2702_v1 = vpop.eup %2701 }
 0xa12   :  { %v34_v2 = vsel %vm32_vm10, %v2702_v1, 0.0  ;;  %v1983_v1 = vld [vmem:[%s3247_s6 + $0x58] sm:$0xff] }
 0xa13   :  { %v918_v57 = vsel %vm132_vm2, %v917_v56, 0.0 }
 0xa14   :  { %919 = vadd.xlane.f32.xlu0 %v918_v57 }
 0xa2a   :  { %1318 = vperm.xlu0 %2690, %v34_v2   ;;  %v1982_v2 = vld [vmem:[%s3247_s6 + $0x50] sm:$0xff] }
 0xa9d   :  { %v920_v3 = vpop.xlane.xlu0 %919 }
 0xa9e   :  { %2703 = vrcp.f32 %v920_v3  ;;  %vm921_vm11 = vcmp.gt.f32.partialorder %v920_v3, 0.0  ;;  %v1981_v3 = vld [vmem:[%s3247_s6 + $0x48] sm:$0xff] }
 0xaa5   :  { %v1319_v33 = vpop.permute.xlu0 %1318 }
 0xaab   :  { %v2704_v4 = vpop.eup %2703 }
 0xaac   :  { %v923_v5 = vsel %vm921_vm11, %v2704_v4, 0.0  ;;  %v1980_v4 = vld [vmem:[%s3247_s6 + $0x40] sm:$0xff] }
 0xaad   :  { %v924_v6 = vmul.f32 %v923_v5, %v917_v56 }
 0xaaf   :  { %2525 = vmatmul.mubr.msk.f32.vlgmr.msra.gmra.mxu0 %vm132_vm2, %v924_v6  ;;  %v2139_v6 = vld [vmem:[%s3247_s6 + $0x98] sm:$0xff] }
 0xab0   :  { %2533 = vmatpush3.msra.mxu0 %v1082_v7  ;;  %2540 = vmatprep.mubr.msk.f32.mxu0 %vm2714_vm0, %v2713_v0  ;;  %v2138_v7 = vld [vmem:[%s3247_s6 + $0x90] sm:$0xff] }
 0xab1   :  { %2534 = vmatprep.subr.mxu0 %v2713_v0 }
 0xab2   :  { %2535 = vmatpush3.msra.mxu0 %v1081_v10 }
 0xab3   :  { %2536 = vmatprep.subr.mxu0 %v2713_v0 }
 0xab4   :  { %2537 = vmatpush3.msra.mxu0 %v1080_v14  ;;  %v2336_v14 = vld [vmem:[%s3244_s5 + $0xe] ss:$0 sm:$0xff] }
 0xab5   :  { %2538 = vmatprep.subr.mxu0 %v2713_v0 }
 0xab6   :  { %2539 = vmatpush3.msra.mxu0 %v1079_v15 }
 0xab7   :  { %2541 = vmatmul.mubr.msk.f32.vlgmr.msra.gmra.mxu0 %vm211_vm3, %v203_v16  ;;  %2554 = vmatprep.subr.mxu0 %v2713_v0 }
 0xab8   :  { %2555 = vmatpush3.msra.mxu0 %v1232_v17  ;;  %2562 = vmatprep.mubr.msk.f32.mxu0 %vm2714_vm0, %v2713_v0 }
 0xab9   :  { %2556 = vmatprep.subr.mxu0 %v2713_v0 }
 0xaba   :  { %2557 = vmatpush3.msra.mxu0 %v1231_v18  ;;  %v1630_v18 = vld [vmem:[%s3244_s5 + $0xd] sm:$0x1] }
 0xabb   :  { %2558 = vmatprep.subr.mxu0 %v2713_v0 }
 0xabc   :  { %2559 = vmatpush3.msra.mxu0 %v1230_v12 }
 0xabd   :  { %2560 = vmatprep.subr.mxu0 %v2713_v0 }
 0xabe   :  { %2561 = vmatpush3.msra.mxu0 %v1229_v19 }
 0xabf   :  { %2563 = vmatmul.mubr.msk.f32.vlgmr.msra.gmra.mxu0 %vm211_vm3, %v2812_v13  ;;  %2576 = vmatprep.subr.mxu0 %v2713_v0  ;;  %v1313_v13 = vld [vmem:[%s3241_s4 + $0xe8] sm:$0xff] }
 0xac0   :  { %2584 = vmatprep.mubr.msk.f32.mxu0 %vm2714_vm0, %v2713_v0  ;;  %2577 = vmatpush3.msra.mxu0 %v1314_v22 }
 0xac1   :  { %2578 = vmatprep.subr.mxu0 %v2713_v0  ;;  %2568 = vmatpush3.msra.mxu1 %v1313_v13 }
 0xac2   :  { %2579 = vmatpush3.msra.mxu0 %v1313_v13  ;;  %2569 = vmatprep.subr.mxu1 %v2713_v0 }
 0xac3   :  { %2580 = vmatprep.subr.mxu0 %v2713_v0  ;;  %2570 = vmatpush3.msra.mxu1 %v1312_v23 }
 0xac4   :  { %2581 = vmatpush3.msra.mxu0 %v1312_v23  ;;  %2571 = vmatprep.subr.mxu1 %v2713_v0 }
 0xac5   :  { %2582 = vmatprep.subr.mxu0 %v2713_v0  ;;  %2572 = vmatpush3.msra.mxu1 %v1311_v24 }
 0xac6   :  { %2583 = vmatpush3.msra.mxu0 %v1311_v24  ;;  %2587 = vmatprep.subr.mxu1 %v2713_v0 }
 0xac7   :  { %2598 = vmatprep.subr.mxu0 %v2713_v0 }
 0xb6f   :  { %v3032_v25 = vpop.f32.mrf.mxu0 }
 0xb71   :  { %v2526_v28 = vpop.f32.mrf.mxu0 }
 0xb77   :  { %v1152_v29 = vpop.f32.mrf.mxu0 }
 0xb78   :  { %v1226_v32 = vadd.f32 %v1225_v20, %v1152_v29 }
 0xb79   :  { %v2542_v31 = vpop.f32.mrf.mxu0 }
 0xb7a   :  { %v1321_v37 = vmul.f32 %v1319_v33, %v1226_v32 }
 0xb7f   :  { %v1307_v36 = vpop.f32.mrf.mxu0 }
 0xb80   :  { %v1308_v38 = vadd.f32 %v2329_v34, %v1307_v36 }
 0xb81   :  { %v2564_v39 = vpop.f32.mrf.mxu0 }
 0xb82   :  { %v1322_v40 = vadd.f32 %v1321_v37, %v1308_v38  ;;  %v1400_v41 = vadd.f32 %v1308_v38, %v1226_v32 }
 0xb84   :  { %2574 = vmatmul.mubr.msk.f32.vlgmr.msra.gmra.mxu1 %vm211_vm3, %v1322_v40  ;;  %2585 = vmatmul.mubr.msk.f32.vlgmr.msra.gmra.mxu0 %vm211_vm3, %v1400_v41 }
 0xb85   :  { %2599 = vmatpush3.msra.mxu0 %v1478_v42  ;;  %2588 = vmatpush3.msra.mxu1 %v1483_v43 }
 0xb86   :  { %2600 = vmatprep.subr.mxu0 %v2713_v0  ;;  %2589 = vmatprep.subr.mxu1 %v2713_v0 }
 0xb87   :  { %2601 = vmatpush3.msra.mxu0 %v1477_v44  ;;  %2595 = vmatprep.mubr.msk.f32.mxu1 %vm2714_vm0, %v2713_v0 }
 0xb88   :  { %2602 = vmatprep.subr.mxu0 %v2713_v0  ;;  %2606 = vmatprep.mubr.msk.f32.mxu0 %vm2714_vm0, %v2713_v0 }
 0xb89   :  { %2590 = vmatpush3.msra.mxu1 %v1482_v45  ;;  %2603 = vmatpush3.msra.mxu0 %v1476_v46 }
 0xb8a   :  { %2591 = vmatprep.subr.mxu1 %v2713_v0  ;;  %2604 = vmatprep.subr.mxu0 %v2713_v0 }
 0xb8b   :  { %2592 = vmatpush3.msra.mxu1 %v1481_v47  ;;  %2605 = vmatpush3.msra.mxu0 %v1475_v48  ;;  %v1904_v47 = vld [vmem:[%s3247_s6 + $0x30] sm:$0xff]  ;;  %v1902_v48 = vld [vmem:[%s3247_s6 + $0x20] sm:$0xff] }
 0xb8c   :  { %2593 = vmatprep.subr.mxu1 %v2713_v0  ;;  %2619 = vmatprep.subr.mxu0 %v2713_v0 }
 0xb8d   :  { %2594 = vmatpush3.msra.mxu1 %v1480_v49  ;;  %v2061_v49 = vld [vmem:[%s3247_s6 + $0x78] sm:$0xff] }
 0xb8e   :  { %2609 = vmatprep.subr.mxu1 %v2713_v0 }
 0xc44   :  { %v1396_v51 = vpop.f32.mrf.mxu1  ;;  %v1470_v52 = vpop.f32.mrf.mxu0 }
 0xc45   :  { %v3078_v53 = vadd.f32 %v2331_v50, %v1396_v51  ;;  %v1471_v54 = vadd.f32 %v2331_v50, %v1470_v52  ;;  %v2060_v50 = vld [vmem:[%s3247_s6 + $0x70] sm:$0xff]  ;;  %v2059_v51 = vld [vmem:[%s3247_s6 + $0x68] sm:$0xff]  ;;  %v2217_v52 = vld [vmem:[%s3247_s6 + $0xb8] sm:$0xff] }
 0xc46   :  { %v2575_v56 = vpop.f32.mrf.mxu1  ;;  %v2586_v57 = vpop.f32.mrf.mxu0 }
 0xc47   :  { %v1474_v58 = vmax.f32 %v3078_v53, 0.0  ;;  %v1479_v59 = vmax.f32 %v1471_v54, 0.0  ;;  %v2215_v56 = vld [vmem:[%s3247_s6 + $0xa8] sm:$0xff] }
 0xc48   :  { %v2339_v57 = vld [vmem:[%s3244_s5 + $0xf] ss:$0 sm:$0xff] }
 0xc49   :  { %2596 = vmatmul.mubr.msk.f32.vlgmr.msra.gmra.mxu1 %vm211_vm3, %v1479_v59  ;;  %2607 = vmatmul.mubr.msk.f32.vlgmr.msra.gmra.mxu0 %vm211_vm3, %v1474_v58 }
 0xc4a   :  { %2620 = vmatpush3.msra.mxu0 %v1821_v60  ;;  %2627 = vmatprep.mubr.msk.f32.mxu0 %vm2714_vm0, %v2713_v0 }
 0xc4b   :  { %2621 = vmatprep.subr.mxu0 %v2713_v0  ;;  %2611 = vmatprep.mubr.msk.f32.mxu1 %vm2714_vm0, %v2713_v0 }
 0xc4c   :  { %2622 = vmatpush3.msra.mxu0 %v1820_v61  ;;  %v2342_v61 = vld [vmem:[%s3248_s7] ss:$0 sm:$0xff] }
 0xc4d   :  { %2623 = vmatprep.subr.mxu0 %v2713_v0 }
 0xc4e   :  { %2624 = vmatpush3.msra.mxu0 %v1819_v62 }
 0xc4f   :  { %2625 = vmatprep.subr.mxu0 %v2713_v0 }
 0xc50   :  { %2626 = vmatpush3.msra.mxu0 %v1818_v63 }
 0xc51   :  { %2628 = vmatmul.mubr.msk.f32.vlgmr.msra.gmra.mxu0 %vm211_vm3, %v2868_v55  ;;  %2641 = vmatprep.subr.mxu0 %v2713_v0  ;;  %v2324_v55 = vld [vmem:[%s3244_s5 + $0xa] ss:$0 sm:$0xff] }
 0xc52   :  { %2642 = vmatpush3.msra.mxu0 %v1983_v1  ;;  %2649 = vmatprep.mubr.msk.f32.mxu0 %vm2714_vm0, %v2713_v0  ;;  %v999_v5 = vadd.f32 %v2324_v55, %v3032_v25 }
 0xc53   :  { %2643 = vmatprep.subr.mxu0 %v2713_v0 }
 0xc54   :  { %2644 = vmatpush3.msra.mxu0 %v1982_v2 }
 0xc55   :  { %2645 = vmatprep.subr.mxu0 %v2713_v0 }
 0xc56   :  { %2646 = vmatpush3.msra.mxu0 %v1981_v3 }
 0xc57   :  { %2647 = vmatprep.subr.mxu0 %v2713_v0 }
 0xc58   :  { %2648 = vmatpush3.msra.mxu0 %v1980_v4 }
 0xc59   :  { %2650 = vmatmul.mubr.msk.f32.vlgmr.msra.gmra.mxu0 %vm211_vm3, %v999_v5  ;;  %2663 = vmatprep.subr.mxu0 %v2713_v0 }
 0xc5a   :  { %2664 = vmatpush3.msra.mxu0 %v2139_v6  ;;  %2671 = vmatprep.mubr.msk.f32.mxu0 %vm2714_vm0, %v2713_v0 }
 0xc5b   :  { %2665 = vmatprep.subr.mxu0 %v2713_v0 }
 0xc5c   :  { %2666 = vmatpush3.msra.mxu0 %v2138_v7 }
 0xc5d   :  { %2667 = vmatprep.subr.mxu0 %v2713_v0 }
 0xc5e   :  { %2668 = vmatpush3.msra.mxu0 %v2137_v8 }
 0xc5f   :  { %2669 = vmatprep.subr.mxu0 %v2713_v0 }
 0xc60   :  { %2670 = vmatpush3.msra.mxu0 %v2136_v9 }
 0xc61   :  { %2672 = vmatmul.mubr.msk.f32.vlgmr.msra.gmra.mxu0 %vm211_vm3, %v1471_v54  ;;  %v2216_v54 = vld [vmem:[%s3247_s6 + $0xb0] sm:$0xff] }
 0xd09   :  { %v1553_v10 = vpop.f32.mrf.mxu1  ;;  %v1626_v11 = vpop.f32.mrf.mxu0 }
 0xd0a   :  { %v1627_v15 = vadd.f32 %v1626_v11, %v1553_v10 }
 0xd0b   :  { %v2597_v16 = vpop.f32.mrf.mxu1  ;;  %v2608_v17 = vpop.f32.mrf.mxu0 }
 0xd0c   :  { %2610 = vmatpush3.xpose.msk.msra.mxu1 %vm211_vm3, %v1627_v15  ;;  %v1637_v12 = vmul.f32 %v2336_v14, %v1627_v15 }
 0xd0d   :  { %2614 = vmatprep.subr.mxu1 %v2713_v0 }
 0xd0e   :  { %v1638_v19 = vsel %vm211_vm3, %v1637_v12, 0.0 }
 0xd0f   :  { %2612 = vmatmul.mubr.msk.f32.vlgmr.msra.gmra.mxu1 %vm211_vm3, %v1630_v18  ;;  %1639 = vadd.xlane.f32.xlu1 %v1638_v19 }
 0xd10   :  { %2615 = vmatpush3.msra.mxu1 %v1627_v15  ;;  %2616 = vmatprep.mubr.msk.f32.mxu1 %vm2714_vm0, %v2713_v0 }
 0xd11   :  { %v3158_v20 = vpop.f32.mrf.mxu0  ;;  %2630 = vmatprep.subr.mxu1 %v2713_v0 }
 0xd13   :  { %v2629_v21 = vpop.f32.mrf.mxu0 }
 0xd19   :  { %v3161_v22 = vpop.f32.mrf.mxu0 }
 0xd1b   :  { %v2651_v13 = vpop.f32.mrf.mxu0 }
 0xd21   :  { %v3163_v23 = vpop.f32.mrf.mxu0 }
 0xd23   :  { %v2673_v24 = vpop.f32.mrf.mxu0 }
 0xd98   :  { %v1640_v29 = vpop.xlane.xlu1 %1639 }
 0xdcf   :  { %v1713_v25 = vpop.f32.mrf.mxu1 }
 0xdd0   :  { %v1720_v28 = vrot.slane %v1713_v25, %v2834_v26 }
 0xdd1   :  { %v2613_v31 = vpop.f32.mrf.mxu1 }
 0xdd2   :  { %v1721_v32 = vadd.f32 %v1720_v28, %v1640_v29 }
 0xdd4   :  { %v1723_v33 = vmul.f32 0.2, %v1721_v32  ;;  %vm1722_vm12 = vcmp.gt.f32.partialorder %v1721_v32, 0.0 }
 0xdd6   :  { %v1724_v34 = vsel %vm1722_vm12, %v1721_v32, %v1723_v33 }
 0xdd7   :  { %v1725_v36 = vadd.f32 %v1724_v34, %v2840_v35  ;;  %v1905_v35 = vld [vmem:[%s3247_s6 + $0x38] sm:$0xff] }
 0xdd9   :  { %v1726_v37 = vsel %vm132_vm2, %v1725_v36, -inf }
 0xdda   :  { %1727 = vmax.xlane.f32.xlu0 %v1726_v37 }
 0xe63   :  { %v1728_v38 = vpop.xlane.xlu0 %1727 }
 0xe64   :  { %v1729_v39 = vsub.f32 %v1725_v36, %v1728_v38 }
 0xe66   :  { %v1730_v40 = vmul.f32 1.442695, %v1729_v39 }
 0xe68   :  { %2705 = vpow2.f32 %v1730_v40 }
 0xe75   :  { %v2706_v41 = vpop.eup %2705 }
 0xe76   :  { %v1732_v42 = vmul.f32 %v2706_v41, %v2836_v27  ;;  %v1903_v27 = vld [vmem:[%s3247_s6 + $0x28] sm:$0xff] }
 0xe78   :  { %v1733_v26 = vsel %vm132_vm2, %v1732_v42, 0.0 }
 0xe79   :  { %1734 = vadd.xlane.f32.xlu1 %v1733_v26 }
 0xf02   :  { %v1735_v43 = vpop.xlane.xlu1 %1734 }
 0xf03   :  { %2707 = vrcp.f32 %v1735_v43  ;;  %vm1736_vm13 = vcmp.gt.f32.partialorder %v1735_v43, 0.0 }
 0xf10   :  { %v2708_v44 = vpop.eup %2707 }
 0xf11   :  { %v1738_v45 = vsel %vm1736_vm13, %v2708_v44, 0.0 }
 0xf12   :  { %v1739_v46 = vmul.f32 %v1738_v45, %v1732_v42 }
 0xf14   :  { %2617 = vmatmul.mubr.msk.f32.vlgmr.msra.gmra.mxu1 %vm132_vm2, %v1739_v46 }
 0xf15   :  { %2631 = vmatpush3.msra.mxu1 %v1905_v35  ;;  %2638 = vmatprep.mubr.msk.f32.mxu1 %vm2714_vm0, %v2713_v0 }
 0xf16   :  { %2632 = vmatprep.subr.mxu1 %v2713_v0 }
 0xf17   :  { %2633 = vmatpush3.msra.mxu1 %v1904_v47 }
 0xf18   :  { %2634 = vmatprep.subr.mxu1 %v2713_v0 }
 0xf19   :  { %2635 = vmatpush3.msra.mxu1 %v1903_v27 }
 0xf1a   :  { %2636 = vmatprep.subr.mxu1 %v2713_v0 }
 0xf1b   :  { %2637 = vmatpush3.msra.mxu1 %v1902_v48 }
 0xf1c   :  { %2639 = vmatmul.mubr.msk.f32.vlgmr.msra.gmra.mxu1 %vm211_vm3, %v2914_v30  ;;  %2652 = vmatprep.subr.mxu1 %v2713_v0  ;;  %v2058_v30 = vld [vmem:[%s3247_s6 + $0x60] sm:$0xff] }
 0xf1d   :  { %2653 = vmatpush3.msra.mxu1 %v2061_v49  ;;  %2660 = vmatprep.mubr.msk.f32.mxu1 %vm2714_vm0, %v2713_v0 }
 0xf1e   :  { %2654 = vmatprep.subr.mxu1 %v2713_v0 }
 0xf1f   :  { %2655 = vmatpush3.msra.mxu1 %v2060_v50 }
 0xf20   :  { %2656 = vmatprep.subr.mxu1 %v2713_v0 }
 0xf21   :  { %2657 = vmatpush3.msra.mxu1 %v2059_v51 }
 0xf22   :  { %2658 = vmatprep.subr.mxu1 %v2713_v0 }
 0xf23   :  { %2659 = vmatpush3.msra.mxu1 %v2058_v30 }
 0xf24   :  { %2661 = vmatmul.mubr.msk.f32.vlgmr.msra.gmra.mxu1 %vm211_vm3, %v3078_v53  ;;  %2674 = vmatprep.subr.mxu1 %v2713_v0  ;;  %v2214_v53 = vld [vmem:[%s3247_s6 + $0xa0] sm:$0xff] }
 0xf25   :  { %2675 = vmatpush3.msra.mxu1 %v2217_v52  ;;  %2682 = vmatprep.mubr.msk.f32.mxu1 %vm2714_vm0, %v2713_v0 }
 0xf26   :  { %2676 = vmatprep.subr.mxu1 %v2713_v0 }
 0xf27   :  { %2677 = vmatpush3.msra.mxu1 %v2216_v54 }
 0xf28   :  { %2678 = vmatprep.subr.mxu1 %v2713_v0 }
 0xf29   :  { %2679 = vmatpush3.msra.mxu1 %v2215_v56 }
 0xf2a   :  { %2680 = vmatprep.subr.mxu1 %v2713_v0  ;;  %v1901_v0 = vadd.f32 %v2342_v61, %v3158_v20 }
 0xf2b   :  { %2681 = vmatpush3.msra.mxu1 %v2214_v53 }
 0xfd4   :  { %v1813_v58 = vpop.f32.mrf.mxu1 }
 0xfd5   :  { %v1814_v59 = vadd.f32 %v2339_v57, %v1813_v58 }
 0xfd6   :  { %v2618_v60 = vpop.f32.mrf.mxu1 }
 0xfd7   :  { %2683 = vmatmul.mubr.msk.f32.vlgmr.msra.gmra.mxu1 %vm211_vm3, %v1814_v59 }
 0xfdc   :  { %v1975_v62 = vpop.f32.mrf.mxu1 }
 0xfdd   :  { %v1979_v63 = vadd.f32 %v1975_v62, %v1901_v0 }
 0xfde   :  { %v2640_v1 = vpop.f32.mrf.mxu1 }
 0xfdf   :  { %v2057_v2 = vadd.f32 %v3161_v22, %v1979_v63 }
 0xfe4   :  { %v2131_v3 = vpop.f32.mrf.mxu1 }
 0xfe5   :  { %v2135_v55 = vadd.f32 %v2131_v3, %v2057_v2 }
 0xfe6   :  { %v2662_v4 = vpop.f32.mrf.mxu1 }
 0xfe7   :  { %v2213_v5 = vadd.f32 %v3163_v23, %v2135_v55 }
0x1097   :  { %v2287_v6 = vpop.f32.mrf.mxu1 }
0x1098   :  { %v2291_v7 = vadd.f32 %v2287_v6, %v2213_v5 }
0x1099   :  { %v2684_v8 = vpop.f32.mrf.mxu1 }
0x109a   :  { %v2348_v9 = vmul.f32 -1.442695, %v2291_v7 }
0x109c   :  { %2709 = vpow2.f32 %v2348_v9 }
0x10a9   :  { %v2710_v10 = vpop.eup %2709 }
0x10aa   :  { %v2295_v11 = vadd.f32 1.0, %v2710_v10 }
0x10ac   :  { %2711 = vrcp.f32 %v2295_v11 }
0x10b9   :  { %v2712_v14 = vpop.eup %2711 }
0x10ba   :  { %2299 = vst.msk [vmem:[%s3249_s8] sm:$0xff] %vm2298_vm14, %v2712_v14 }

</bundles_post_ra>
